<compile_context>
chip_gen: v7x
topology: tpu7x:2x2x1
jax: 0.10.0
libtpu: 0.0.40
codegen_flags: <defaults>
</compile_context>

<pallas_src>
import functools

import jax
import jax.numpy as jnp
import numpy as np
from jax import lax
from jax.experimental import pallas as pl
from jax.experimental.pallas import tpu as pltpu

HIDDEN_SIZE = 128
STATIC_FEATURES = 2


def _round_up(x, m):
  return ((x + m - 1) // m) * m


def _encoder_gru_kernel(x_ref, wx_ref, bgi_ref, whh_ref, bhn_ref,
                        out_ref, hid_ref, gi_scr, h_scr,
                        *, t_block, hidden, unroll, matmul_precision):
  """One grid step = one (batch block, time chunk).

  x_ref   : (T_blk, B_blk, F)  time-major raw-input chunk
  wx_ref  : (F, 3H)  fused input weight  (W_ih @ W_emb).T
  bgi_ref : (1, 3H)  fused input bias (W_ih@b_emb + b_ih) with b_hh folded
                     into the r/z thirds only (the n third of b_hh must stay
                     inside r*(gh_n + b_hn) to match PyTorch).
  whh_ref : (H, 3H)  recurrent weight W_hh.T (bf16 or f32), gate order r, z, n
  bhn_ref : (1, H)   b_hh n-gate slice
  out_ref : (B_blk, T_blk, H) per-timestep outputs (batch-first, lane-dense)
  hid_ref : (B_blk, H) final hidden state (written on the last time chunk)
  gi_scr  : (T_blk, B_blk, 3H) VMEM scratch: time-major gate pre-activations
  h_scr   : (B_blk, H) hidden state carried across time chunks
  """
  tb = pl.program_id(1)
  H = hidden
  G = 3 * H
  F = x_ref.shape[2]

  @pl.when(tb == 0)
  def _():
    h_scr[...] = jnp.zeros_like(h_scr)

  # ---- Off the serial path: all non-recurrent work for the whole chunk. ----
  # gi[t, b, :] = W_ih (W_emb x + b_emb) + b_ih (+ b_hr / b_hz), computed as
  # F (=2) lane-broadcast FMAs (no matmul needed since F is tiny) and written
  # TIME-MAJOR into a VMEM scratch so the recurrence does a contiguous
  # leading-dim read per step.  (Dropout: identity in eval mode.)
  x_blk = x_ref[...].astype(jnp.float32)                        # (T, B, F)
  wx = wx_ref[...]                                              # (F, G)
  gi = x_blk[:, :, 0:1] * wx[0:1, :].reshape(1, 1, G)
  for f in range(1, F):
    gi = gi + x_blk[:, :, f:f + 1] * wx[f:f + 1, :].reshape(1, 1, G)
  gi_scr[...] = gi + bgi_ref[...].reshape(1, 1, G)

  # Recurrent weights stay resident in vregs across the whole chunk.
  # TODO(synk): drive the MXU weight-stationary via pltpu.matmul_push_rhs /
  #             matmul_acc_lhs / matmul_pop to avoid re-staging W_hh per step.
  whh = whh_ref[...]                                            # (H, G)
  bhn = bhn_ref[...]                                            # (1, H)

  def step(t, h):
    gi_t = gi_scr[t]                                            # (B, G)
    gh = jnp.dot(h.astype(whh.dtype), whh,
                 preferred_element_type=jnp.float32,
                 precision=matmul_precision)                    # (B, G)
    # sigmoid(v) = 0.5*tanh(0.5*v) + 0.5  -> one EUP push per gate.
    r = 0.5 * jnp.tanh(0.5 * (gi_t[:, 0 * H:1 * H] + gh[:, 0 * H:1 * H])) + 0.5
    z = 0.5 * jnp.tanh(0.5 * (gi_t[:, 1 * H:2 * H] + gh[:, 1 * H:2 * H])) + 0.5
    n = jnp.tanh(gi_t[:, 2 * H:3 * H] + r * (gh[:, 2 * H:3 * H] + bhn))
    h_new = n + z * (h - n)                                     # == (1-z)n + z h
    # TODO(synk): on v5e, buffering h per-step into a time-major VMEM scratch
    #             and doing one bulk store per chunk would avoid the per-step
    #             masked store (needs a sublane-dim transpose at chunk end).
    out_ref[:, t, :] = h_new.astype(out_ref.dtype)
    return h_new

  h = lax.fori_loop(0, t_block, step, h_scr[...], unroll=unroll)
  h_scr[...] = h

  @pl.when(tb == pl.num_programs(1) - 1)
  def _():
    hid_ref[...] = h.astype(hid_ref.dtype)


def _choose_batch_block(batch):
  """Batch rows per grid step along the leading ("parallel") grid axis.

  Splitting the batch lets v7x run independent GRU chains on its two
  TensorCores.  Only split when every block keeps full 8-row sublane tiles;
  otherwise (e.g. the B=2 demo) the split would just serialize extra work on
  single-TC chips.  For real workloads, batch as many sequences as possible
  into one call -- extra rows ride the same serial chain essentially for free.
  """
  if batch >= 16 and batch % 16 == 0:
    return batch // 2
  return batch


def _choose_t_block(seq_len, b_blk, hidden, feat, *, max_t_block=256,
                    vmem_budget_bytes=6 * 1024 * 1024):
  """Timesteps per grid step, derived from a VMEM budget.

  The time axis is serial, so larger chunks directly amortize the ~600-cycle
  per-grid-step pipeline overhead.  The 6 MiB budget keeps the double-buffered
  input/output blocks plus the (sublane-padded) time-major gi scratch well
  under every generation's default scoped-VMEM limit (v5e 16 MiB, v6e/v7x
  32 MiB, and far under v7x's 64 MiB physical).  `max_t_block` additionally
  bounds the straight-line code size of the per-chunk gi fill.
  """
  G = 3 * hidden
  b_pad = _round_up(max(b_blk, 1), 8)
  bytes_per_t = (
      2 * b_pad * _round_up(feat, 128) * 4       # x chunk, double-buffered
      + b_pad * _round_up(G, 128) * 4            # gi scratch (time-major)
      + 2 * b_blk * _round_up(hidden, 128) * 4)  # out chunk, double-buffered
  const_bytes = 512 * 1024                       # weights + small scratch
  cap = max(8, (vmem_budget_bytes - const_bytes) // bytes_per_t)
  cap = min(cap, max_t_block)
  if seq_len <= cap:
    return seq_len                               # whole sequence in one chunk
  t = (cap // 8) * 8
  while t >= 8 and seq_len % t:
    t -= 8
  if t >= 8:
    return t
  # TODO(synk): ragged sequences longer than the VMEM budget (no multiple-of-8
  # divisor) fall back to a single whole-sequence chunk.
  return seq_len


@functools.partial(jax.jit, static_argnames=("max_t_block", "mxu_dtype"))
def encoder_forward(x, w_emb, b_emb, w_ih, b_ih, w_hh, b_hh, *,
                    max_t_block=256, mxu_dtype=jnp.bfloat16):
  """x: (B, S, F) batch-first, like the PyTorch module. Returns (output, hidden).

  mxu_dtype selects the recurrent matmul's operand precision explicitly:
    * jnp.bfloat16 (default): bf16 operands, f32 accumulation -- one MXU pass
      per serial step (fastest chain; small drift vs. a strict f32 GRU).
    * jnp.float32: exact f32 recurrence at lax.Precision.HIGHEST.
  """
  B, S, F = x.shape
  H = w_emb.shape[0]
  G = 3 * H

  b_blk = _choose_batch_block(B)
  t_blk = _choose_t_block(S, b_blk, H, F, max_t_block=max_t_block)
  assert S % t_blk == 0
  n_b = B // b_blk
  n_t = S // t_blk

  f32 = jnp.float32
  hi = lax.Precision.HIGHEST
  w_emb = w_emb.astype(f32); b_emb = b_emb.astype(f32)
  w_ih = w_ih.astype(f32); b_ih = b_ih.astype(f32)
  w_hh = w_hh.astype(f32); b_hh = b_hh.astype(f32)

  # Fold the embedding Linear (+ eval-mode dropout = identity) into the GRU
  # input weights (exact in eval mode), and fold b_hh's r/z thirds into the
  # same bias.  The n third must stay inside r*(gh_n + b_hn) (PyTorch GRU).
  wx = jnp.transpose(jnp.dot(w_ih, w_emb, precision=hi))                 # (F, 3H)
  bgi = jnp.dot(w_ih, b_emb, precision=hi) + b_ih
  bgi = (bgi + jnp.concatenate([b_hh[:2 * H], jnp.zeros((H,), f32)])
         ).reshape(1, G)
  whh = jnp.transpose(w_hh).astype(mxu_dtype)                            # (H, 3H)
  bhn = b_hh[2 * H:].reshape(1, H)

  # Time-major input (cheap wrapper transpose of a tiny (B, S, 2) array) so
  # the in-kernel gi fill needs no transpose at all.
  x_tm = jnp.transpose(x.astype(f32), (1, 0, 2))                         # (S, B, F)

  matmul_precision = None if mxu_dtype == jnp.bfloat16 else hi
  kernel = functools.partial(
      _encoder_gru_kernel, t_block=t_blk, hidden=H,
      unroll=int(min(8, t_blk)), matmul_precision=matmul_precision)

  out, hid = pl.pallas_call(
      kernel,
      out_shape=(
          jax.ShapeDtypeStruct((B, S, H), f32),
          jax.ShapeDtypeStruct((B, H), f32),
      ),
      grid_spec=pltpu.PrefetchScalarGridSpec(
          num_scalar_prefetch=0,
          grid=(n_b, n_t),                     # (parallel batch, serial time)
          in_specs=[
              pl.BlockSpec((t_blk, b_blk, F), lambda bb, tb: (tb, bb, 0)),
              pl.BlockSpec((F, G), lambda bb, tb: (0, 0)),
              pl.BlockSpec((1, G), lambda bb, tb: (0, 0)),
              pl.BlockSpec((H, G), lambda bb, tb: (0, 0)),
              pl.BlockSpec((1, H), lambda bb, tb: (0, 0)),
          ],
          out_specs=[
              pl.BlockSpec((b_blk, t_blk, H), lambda bb, tb: (bb, tb, 0)),
              pl.BlockSpec((b_blk, H), lambda bb, tb: (bb, 0)),
          ],
          scratch_shapes=[
              pltpu.VMEM((t_blk, b_blk, G), f32),   # time-major gate pre-acts
              pltpu.VMEM((b_blk, H), f32),          # carried hidden state
          ]),
      compiler_params=pltpu.CompilerParams(
          dimension_semantics=("parallel", "arbitrary")),
  )(x_tm, wx, bgi, whh, bhn)

  # output already batch-first (B, S, H); hidden is (1, B, H) like nn.GRU.
  return out, hid[None, :, :]


@functools.partial(jax.jit, static_argnames=("mxu_dtype",))
def encoder_forward_ref(x, w_emb, b_emb, w_ih, b_ih, w_hh, b_hh,
                        mxu_dtype=jnp.float32):
  """Pure-JAX reference with torch GRU semantics (eval-mode dropout).

  mxu_dtype=bfloat16 mirrors the kernel's explicit bf16 MXU operands on the
  recurrent matmul (f32 accumulation) for an apples-to-apples check.
  """
  B, S, F = x.shape
  H = w_emb.shape[0]
  hi = lax.Precision.HIGHEST
  sigmoid = lambda v: 0.5 * jnp.tanh(0.5 * v) + 0.5   # == logistic sigmoid
  emb = jnp.dot(x, w_emb.T, precision=hi) + b_emb     # (B, S, H)
  w_hh_t = w_hh.T.astype(mxu_dtype)
  prec_h = hi if mxu_dtype == jnp.float32 else None

  def step(h, e_t):
    gi = jnp.dot(e_t, w_ih.T, precision=hi) + b_ih
    gh = jnp.dot(h.astype(mxu_dtype), w_hh_t,
                 preferred_element_type=jnp.float32, precision=prec_h) + b_hh
    r = sigmoid(gi[:, :H] + gh[:, :H])
    z = sigmoid(gi[:, H:2 * H] + gh[:, H:2 * H])
    n = jnp.tanh(gi[:, 2 * H:] + r * gh[:, 2 * H:])
    h_new = (1.0 - z) * n + z * h
    return h_new, h_new

  h0 = jnp.zeros((B, H), jnp.float32)
  h_last, outs = lax.scan(step, h0, jnp.transpose(emb, (1, 0, 2)))
  return jnp.transpose(outs, (1, 0, 2)), h_last[None]


def init_params(key, hidden_size=HIDDEN_SIZE, static_features=STATIC_FEATURES):
  """Deterministic parameter init mirroring the PyTorch module's shapes."""
  ks = jax.random.split(key, 6)
  H, F = hidden_size, static_features
  lin_bound = 1.0 / np.sqrt(F)
  gru_bound = 1.0 / np.sqrt(H)
  w_emb = jax.random.uniform(ks[0], (H, F), jnp.float32, -lin_bound, lin_bound)
  b_emb = jax.random.uniform(ks[1], (H,), jnp.float32, -lin_bound, lin_bound)
  w_ih = jax.random.uniform(ks[2], (3 * H, H), jnp.float32, -gru_bound, gru_bound)
  b_ih = jax.random.uniform(ks[3], (3 * H,), jnp.float32, -gru_bound, gru_bound)
  w_hh = jax.random.uniform(ks[4], (3 * H, H), jnp.float32, -gru_bound, gru_bound)
  b_hh = jax.random.uniform(ks[5], (3 * H,), jnp.float32, -gru_bound, gru_bound)
  return w_emb, b_emb, w_ih, b_ih, w_hh, b_hh


if __name__ == "__main__":
  key = jax.random.PRNGKey(0)
  k_in, k_par = jax.random.split(key)
  params = init_params(k_par)
  B = 2

  # (S, max_t_block): S=8 / S=24 -> whole sequence in a single chunk (the
  # VMEM-budgeted default); (32, 8) forces 4 time chunks to exercise the
  # carried hidden-state scratch and the gated final-hidden write.
  for S, max_tb in ((8, 256), (24, 256), (32, 8)):
    x = jax.random.normal(jax.random.fold_in(k_in, S),
                          (B, S, STATIC_FEATURES), jnp.float32)

    # Fast path (default): explicit bf16 MXU operands on the recurrence.
    out, hid = encoder_forward(x, *params, max_t_block=max_tb)
    out, hid = jax.block_until_ready((out, hid))
    ref_out, ref_hid = encoder_forward_ref(x, *params, mxu_dtype=jnp.bfloat16)
    np.testing.assert_allclose(np.asarray(out), np.asarray(ref_out),
                               rtol=1e-2, atol=1e-2)
    np.testing.assert_allclose(np.asarray(hid), np.asarray(ref_hid),
                               rtol=1e-2, atol=1e-2)
    assert out.shape == (B, S, HIDDEN_SIZE)
    assert hid.shape == (1, B, HIDDEN_SIZE)

  # Exact path: f32 recurrence at explicit HIGHEST precision matches the
  # strict f32 (torch-semantics) reference tightly.
  S = 24
  x = jax.random.normal(jax.random.fold_in(k_in, S),
                        (B, S, STATIC_FEATURES), jnp.float32)
  out32, hid32 = encoder_forward(x, *params, mxu_dtype=jnp.float32)
  out32, hid32 = jax.block_until_ready((out32, hid32))
  ref_out, ref_hid = encoder_forward_ref(x, *params)
  np.testing.assert_allclose(np.asarray(out32), np.asarray(ref_out),
                             rtol=1e-4, atol=1e-4)
  np.testing.assert_allclose(np.asarray(hid32), np.asarray(ref_hid),
                             rtol=1e-4, atol=1e-4)

  print("KERNEL_OK")
</pallas_src>

<mosaic_0001>
module attributes {stable_mosaic.version = 11 : i64} {
  func.func @_encoder_gru_kernel(%arg0: i32, %arg1: i32, %arg2: memref<8x2x2xf32, #tpu.memory_space<vmem>>, %arg3: memref<2x384xf32, #tpu.memory_space<vmem>>, %arg4: memref<1x384xf32, #tpu.memory_space<vmem>>, %arg5: memref<128x384xbf16, #tpu.memory_space<vmem>>, %arg6: memref<1x128xf32, #tpu.memory_space<vmem>>, %arg7: memref<2x8x128xf32, #tpu.memory_space<vmem>>, %arg8: memref<2x128xf32, #tpu.memory_space<vmem>>, %arg9: memref<8x2x384xf32, #tpu.memory_space<vmem>>, %arg10: memref<2x128xf32, #tpu.memory_space<vmem>>) attributes {dimension_semantics = [#tpu.dimension_semantics<parallel>, #tpu.dimension_semantics<arbitrary>], iteration_bounds = array<i64: 1, 1>, scalar_prefetch = 0 : i64, scratch_operands = 2 : i64, tpu.core_type = #tpu.core_type<tc>, window_params = [{transform_indices = @transform_0, window_bounds = array<i64: 8, 2, 2>}, {pipeline_mode = #tpu.pipeline_mode<synchronous>, transform_indices = @transform_1, window_bounds = array<i64: 2, 384>}, {pipeline_mode = #tpu.pipeline_mode<synchronous>, transform_indices = @transform_2, window_bounds = array<i64: 1, 384>}, {pipeline_mode = #tpu.pipeline_mode<synchronous>, transform_indices = @transform_3, window_bounds = array<i64: 128, 384>}, {pipeline_mode = #tpu.pipeline_mode<synchronous>, transform_indices = @transform_4, window_bounds = array<i64: 1, 128>}, {transform_indices = @transform_5, window_bounds = array<i64: 2, 8, 128>}, {transform_indices = @transform_6, window_bounds = array<i64: 2, 128>}]} {
    %c0_i32 = arith.constant 0 : i32
    %0 = arith.cmpi eq, %arg1, %c0_i32 : i32
    %1 = arith.extui %0 : i1 to i32
    %c0_i32_0 = arith.constant 0 : i32
    %2 = arith.cmpi ne, %1, %c0_i32_0 : i32
    scf.if %2 {
      %cst_108 = arith.constant 0.000000e+00 : f32
      %342 = vector.broadcast %cst_108 : f32 to vector<2x128xf32>
      %c0_109 = arith.constant 0 : index
      %c0_110 = arith.constant 0 : index
      %343 = vector.load %arg10[%c0_109, %c0_110] : memref<2x128xf32, #tpu.memory_space<vmem>>, vector<2x128xf32>
      tpu.vector_store %arg10[%c0_109, %c0_110], %342 {strides = array<i32>} : memref<2x128xf32, #tpu.memory_space<vmem>>, vector<2x128xf32>,
    } else {
    }
    %c0 = arith.constant 0 : index
    %c0_1 = arith.constant 0 : index
    %c0_2 = arith.constant 0 : index
    %3 = vector.load %arg2[%c0, %c0_1, %c0_2] : memref<8x2x2xf32, #tpu.memory_space<vmem>>, vector<8x2x2xf32>
    %c0_3 = arith.constant 0 : index
    %c0_4 = arith.constant 0 : index
    %4 = vector.load %arg3[%c0_3, %c0_4] : memref<2x384xf32, #tpu.memory_space<vmem>>, vector<2x384xf32>
    %5 = vector.extract_strided_slice %3 {offsets = [0, 0, 0], sizes = [8, 2, 1], strides = [1, 1, 1]} : vector<8x2x2xf32> to vector<8x2x1xf32>
    %6 = vector.extract_strided_slice %4 {offsets = [0, 0], sizes = [1, 384], strides = [1, 1]} : vector<2x384xf32> to vector<1x384xf32>
    %7 = vector.shape_cast %6 : vector<1x384xf32> to vector<1x1x384xf32>
    %8 = vector.broadcast %5 : vector<8x2x1xf32> to vector<8x2x384xf32>
    %9 = vector.broadcast %7 : vector<1x1x384xf32> to vector<8x2x384xf32>
    %10 = arith.mulf %8, %9 : vector<8x2x384xf32>
    %11 = vector.extract_strided_slice %3 {offsets = [0, 0, 1], sizes = [8, 2, 1], strides = [1, 1, 1]} : vector<8x2x2xf32> to vector<8x2x1xf32>
    %12 = vector.extract_strided_slice %4 {offsets = [1, 0], sizes = [1, 384], strides = [1, 1]} : vector<2x384xf32> to vector<1x384xf32>
    %13 = vector.shape_cast %12 : vector<1x384xf32> to vector<1x1x384xf32>
    %14 = vector.broadcast %11 : vector<8x2x1xf32> to vector<8x2x384xf32>
    %15 = vector.broadcast %13 : vector<1x1x384xf32> to vector<8x2x384xf32>
    %16 = arith.mulf %14, %15 : vector<8x2x384xf32>
    %17 = arith.addf %10, %16 : vector<8x2x384xf32>
    %c0_5 = arith.constant 0 : index
    %c0_6 = arith.constant 0 : index
    %18 = vector.load %arg4[%c0_5, %c0_6] : memref<1x384xf32, #tpu.memory_space<vmem>>, vector<1x384xf32>
    %19 = vector.shape_cast %18 : vector<1x384xf32> to vector<1x1x384xf32>
    %20 = vector.broadcast %19 : vector<1x1x384xf32> to vector<8x2x384xf32>
    %21 = arith.addf %17, %20 : vector<8x2x384xf32>
    %c0_7 = arith.constant 0 : index
    %c0_8 = arith.constant 0 : index
    %c0_9 = arith.constant 0 : index
    %22 = vector.load %arg9[%c0_7, %c0_8, %c0_9] : memref<8x2x384xf32, #tpu.memory_space<vmem>>, vector<8x2x384xf32>
    tpu.vector_store %arg9[%c0_7, %c0_8, %c0_9], %21 {strides = array<i32>} : memref<8x2x384xf32, #tpu.memory_space<vmem>>, vector<8x2x384xf32>,
    %c0_10 = arith.constant 0 : index
    %c0_11 = arith.constant 0 : index
    %23 = vector.load %arg5[%c0_10, %c0_11] : memref<128x384xbf16, #tpu.memory_space<vmem>>, vector<128x384xbf16>
    %c0_12 = arith.constant 0 : index
    %c0_13 = arith.constant 0 : index
    %24 = vector.load %arg6[%c0_12, %c0_13] : memref<1x128xf32, #tpu.memory_space<vmem>>, vector<1x128xf32>
    %c0_14 = arith.constant 0 : index
    %c0_15 = arith.constant 0 : index
    %25 = vector.load %arg10[%c0_14, %c0_15] : memref<2x128xf32, #tpu.memory_space<vmem>>, vector<2x128xf32>
    %c0_i32_16 = arith.constant 0 : i32
    %26 = arith.index_cast %c0_i32_16 : i32 to index
    %c0_17 = arith.constant 0 : index
    %c0_18 = arith.constant 0 : index
    %27 = vector.load %arg9[%26, %c0_17, %c0_18] : memref<8x2x384xf32, #tpu.memory_space<vmem>>, vector<1x2x384xf32>
    %28 = vector.shape_cast %27 : vector<1x2x384xf32> to vector<2x384xf32>
    %29 = arith.truncf %25 : vector<2x128xf32> to vector<2x128xbf16>
    %cst = arith.constant dense<0.000000e+00> : vector<2x384xf32>
    %30 = tpu.matmul %29, %23, %cst {dimension_numbers = #tpu.dot_dimension_numbers<[1], [0], [0], [1], [0, 0, 1, 1], [], []>} : vector<2x128xbf16>, vector<128x384xbf16>, vector<2x384xf32> -> vector<2x384xf32>
    %31 = vector.extract_strided_slice %28 {offsets = [0, 0], sizes = [2, 128], strides = [1, 1]} : vector<2x384xf32> to vector<2x128xf32>
    %32 = vector.extract_strided_slice %30 {offsets = [0, 0], sizes = [2, 128], strides = [1, 1]} : vector<2x384xf32> to vector<2x128xf32>
    %33 = arith.addf %31, %32 : vector<2x128xf32>
    %cst_19 = arith.constant 5.000000e-01 : f32
    %34 = vector.broadcast %cst_19 : f32 to vector<2x128xf32>
    %35 = arith.mulf %34, %33 : vector<2x128xf32>
    %36 = math.tanh %35 : vector<2x128xf32>
    %cst_20 = arith.constant 5.000000e-01 : f32
    %37 = vector.broadcast %cst_20 : f32 to vector<2x128xf32>
    %38 = arith.mulf %37, %36 : vector<2x128xf32>
    %cst_21 = arith.constant 5.000000e-01 : f32
    %39 = vector.broadcast %cst_21 : f32 to vector<2x128xf32>
    %40 = arith.addf %38, %39 : vector<2x128xf32>
    %41 = vector.extract_strided_slice %28 {offsets = [0, 128], sizes = [2, 128], strides = [1, 1]} : vector<2x384xf32> to vector<2x128xf32>
    %42 = vector.extract_strided_slice %30 {offsets = [0, 128], sizes = [2, 128], strides = [1, 1]} : vector<2x384xf32> to vector<2x128xf32>
    %43 = arith.addf %41, %42 : vector<2x128xf32>
    %cst_22 = arith.constant 5.000000e-01 : f32
    %44 = vector.broadcast %cst_22 : f32 to vector<2x128xf32>
    %45 = arith.mulf %44, %43 : vector<2x128xf32>
    %46 = math.tanh %45 : vector<2x128xf32>
    %cst_23 = arith.constant 5.000000e-01 : f32
    %47 = vector.broadcast %cst_23 : f32 to vector<2x128xf32>
    %48 = arith.mulf %47, %46 : vector<2x128xf32>
    %cst_24 = arith.constant 5.000000e-01 : f32
    %49 = vector.broadcast %cst_24 : f32 to vector<2x128xf32>
    %50 = arith.addf %48, %49 : vector<2x128xf32>
    %51 = vector.extract_strided_slice %28 {offsets = [0, 256], sizes = [2, 128], strides = [1, 1]} : vector<2x384xf32> to vector<2x128xf32>
    %52 = vector.extract_strided_slice %30 {offsets = [0, 256], sizes = [2, 128], strides = [1, 1]} : vector<2x384xf32> to vector<2x128xf32>
    %53 = vector.broadcast %24 : vector<1x128xf32> to vector<2x128xf32>
    %54 = arith.addf %52, %53 : vector<2x128xf32>
    %55 = arith.mulf %40, %54 : vector<2x128xf32>
    %56 = arith.addf %51, %55 : vector<2x128xf32>
    %57 = math.tanh %56 : vector<2x128xf32>
    %58 = arith.subf %25, %57 : vector<2x128xf32>
    %59 = arith.mulf %50, %58 : vector<2x128xf32>
    %60 = arith.addf %57, %59 : vector<2x128xf32>
    %c0_25 = arith.constant 0 : index
    %61 = arith.index_cast %c0_i32_16 : i32 to index
    %c0_26 = arith.constant 0 : index
    %62 = vector.load %arg7[%c0_25, %61, %c0_26] : memref<2x8x128xf32, #tpu.memory_space<vmem>>, vector<2x1x128xf32>
    %63 = vector.shape_cast %62 : vector<2x1x128xf32> to vector<2x128xf32>
    %64 = vector.shape_cast %60 : vector<2x128xf32> to vector<2x1x128xf32>
    tpu.vector_store %arg7[%c0_25, %61, %c0_26], %64 {strides = array<i32>} : memref<2x8x128xf32, #tpu.memory_space<vmem>>, vector<2x1x128xf32>,
    %c1_i32 = arith.constant 1 : i32
    %65 = arith.index_cast %c1_i32 : i32 to index
    %c0_27 = arith.constant 0 : index
    %c0_28 = arith.constant 0 : index
    %66 = vector.load %arg9[%65, %c0_27, %c0_28] : memref<8x2x384xf32, #tpu.memory_space<vmem>>, vector<1x2x384xf32>
    %67 = vector.shape_cast %66 : vector<1x2x384xf32> to vector<2x384xf32>
    %68 = arith.truncf %60 : vector<2x128xf32> to vector<2x128xbf16>
    %cst_29 = arith.constant dense<0.000000e+00> : vector<2x384xf32>
    %69 = tpu.matmul %68, %23, %cst_29 {dimension_numbers = #tpu.dot_dimension_numbers<[1], [0], [0], [1], [0, 0, 1, 1], [], []>} : vector<2x128xbf16>, vector<128x384xbf16>, vector<2x384xf32> -> vector<2x384xf32>
    %70 = vector.extract_strided_slice %67 {offsets = [0, 0], sizes = [2, 128], strides = [1, 1]} : vector<2x384xf32> to vector<2x128xf32>
    %71 = vector.extract_strided_slice %69 {offsets = [0, 0], sizes = [2, 128], strides = [1, 1]} : vector<2x384xf32> to vector<2x128xf32>
    %72 = arith.addf %70, %71 : vector<2x128xf32>
    %cst_30 = arith.constant 5.000000e-01 : f32
    %73 = vector.broadcast %cst_30 : f32 to vector<2x128xf32>
    %74 = arith.mulf %73, %72 : vector<2x128xf32>
    %75 = math.tanh %74 : vector<2x128xf32>
    %cst_31 = arith.constant 5.000000e-01 : f32
    %76 = vector.broadcast %cst_31 : f32 to vector<2x128xf32>
    %77 = arith.mulf %76, %75 : vector<2x128xf32>
    %cst_32 = arith.constant 5.000000e-01 : f32
    %78 = vector.broadcast %cst_32 : f32 to vector<2x128xf32>
    %79 = arith.addf %77, %78 : vector<2x128xf32>
    %80 = vector.extract_strided_slice %67 {offsets = [0, 128], sizes = [2, 128], strides = [1, 1]} : vector<2x384xf32> to vector<2x128xf32>
    %81 = vector.extract_strided_slice %69 {offsets = [0, 128], sizes = [2, 128], strides = [1, 1]} : vector<2x384xf32> to vector<2x128xf32>
    %82 = arith.addf %80, %81 : vector<2x128xf32>
    %cst_33 = arith.constant 5.000000e-01 : f32
    %83 = vector.broadcast %cst_33 : f32 to vector<2x128xf32>
    %84 = arith.mulf %83, %82 : vector<2x128xf32>
    %85 = math.tanh %84 : vector<2x128xf32>
    %cst_34 = arith.constant 5.000000e-01 : f32
    %86 = vector.broadcast %cst_34 : f32 to vector<2x128xf32>
    %87 = arith.mulf %86, %85 : vector<2x128xf32>
    %cst_35 = arith.constant 5.000000e-01 : f32
    %88 = vector.broadcast %cst_35 : f32 to vector<2x128xf32>
    %89 = arith.addf %87, %88 : vector<2x128xf32>
    %90 = vector.extract_strided_slice %67 {offsets = [0, 256], sizes = [2, 128], strides = [1, 1]} : vector<2x384xf32> to vector<2x128xf32>
    %91 = vector.extract_strided_slice %69 {offsets = [0, 256], sizes = [2, 128], strides = [1, 1]} : vector<2x384xf32> to vector<2x128xf32>
    %92 = vector.broadcast %24 : vector<1x128xf32> to vector<2x128xf32>
    %93 = arith.addf %91, %92 : vector<2x128xf32>
    %94 = arith.mulf %79, %93 : vector<2x128xf32>
    %95 = arith.addf %90, %94 : vector<2x128xf32>
    %96 = math.tanh %95 : vector<2x128xf32>
    %97 = arith.subf %60, %96 : vector<2x128xf32>
    %98 = arith.mulf %89, %97 : vector<2x128xf32>
    %99 = arith.addf %96, %98 : vector<2x128xf32>
    %c0_36 = arith.constant 0 : index
    %100 = arith.index_cast %c1_i32 : i32 to index
    %c0_37 = arith.constant 0 : index
    %101 = vector.load %arg7[%c0_36, %100, %c0_37] : memref<2x8x128xf32, #tpu.memory_space<vmem>>, vector<2x1x128xf32>
    %102 = vector.shape_cast %101 : vector<2x1x128xf32> to vector<2x128xf32>
    %103 = vector.shape_cast %99 : vector<2x128xf32> to vector<2x1x128xf32>
    tpu.vector_store %arg7[%c0_36, %100, %c0_37], %103 {strides = array<i32>} : memref<2x8x128xf32, #tpu.memory_space<vmem>>, vector<2x1x128xf32>,
    %c2_i32 = arith.constant 2 : i32
    %104 = arith.index_cast %c2_i32 : i32 to index
    %c0_38 = arith.constant 0 : index
    %c0_39 = arith.constant 0 : index
    %105 = vector.load %arg9[%104, %c0_38, %c0_39] : memref<8x2x384xf32, #tpu.memory_space<vmem>>, vector<1x2x384xf32>
    %106 = vector.shape_cast %105 : vector<1x2x384xf32> to vector<2x384xf32>
    %107 = arith.truncf %99 : vector<2x128xf32> to vector<2x128xbf16>
    %cst_40 = arith.constant dense<0.000000e+00> : vector<2x384xf32>
    %108 = tpu.matmul %107, %23, %cst_40 {dimension_numbers = #tpu.dot_dimension_numbers<[1], [0], [0], [1], [0, 0, 1, 1], [], []>} : vector<2x128xbf16>, vector<128x384xbf16>, vector<2x384xf32> -> vector<2x384xf32>
    %109 = vector.extract_strided_slice %106 {offsets = [0, 0], sizes = [2, 128], strides = [1, 1]} : vector<2x384xf32> to vector<2x128xf32>
    %110 = vector.extract_strided_slice %108 {offsets = [0, 0], sizes = [2, 128], strides = [1, 1]} : vector<2x384xf32> to vector<2x128xf32>
    %111 = arith.addf %109, %110 : vector<2x128xf32>
    %cst_41 = arith.constant 5.000000e-01 : f32
    %112 = vector.broadcast %cst_41 : f32 to vector<2x128xf32>
    %113 = arith.mulf %112, %111 : vector<2x128xf32>
    %114 = math.tanh %113 : vector<2x128xf32>
    %cst_42 = arith.constant 5.000000e-01 : f32
    %115 = vector.broadcast %cst_42 : f32 to vector<2x128xf32>
    %116 = arith.mulf %115, %114 : vector<2x128xf32>
    %cst_43 = arith.constant 5.000000e-01 : f32
    %117 = vector.broadcast %cst_43 : f32 to vector<2x128xf32>
    %118 = arith.addf %116, %117 : vector<2x128xf32>
    %119 = vector.extract_strided_slice %106 {offsets = [0, 128], sizes = [2, 128], strides = [1, 1]} : vector<2x384xf32> to vector<2x128xf32>
    %120 = vector.extract_strided_slice %108 {offsets = [0, 128], sizes = [2, 128], strides = [1, 1]} : vector<2x384xf32> to vector<2x128xf32>
    %121 = arith.addf %119, %120 : vector<2x128xf32>
    %cst_44 = arith.constant 5.000000e-01 : f32
    %122 = vector.broadcast %cst_44 : f32 to vector<2x128xf32>
    %123 = arith.mulf %122, %121 : vector<2x128xf32>
    %124 = math.tanh %123 : vector<2x128xf32>
    %cst_45 = arith.constant 5.000000e-01 : f32
    %125 = vector.broadcast %cst_45 : f32 to vector<2x128xf32>
    %126 = arith.mulf %125, %124 : vector<2x128xf32>
    %cst_46 = arith.constant 5.000000e-01 : f32
    %127 = vector.broadcast %cst_46 : f32 to vector<2x128xf32>
    %128 = arith.addf %126, %127 : vector<2x128xf32>
    %129 = vector.extract_strided_slice %106 {offsets = [0, 256], sizes = [2, 128], strides = [1, 1]} : vector<2x384xf32> to vector<2x128xf32>
    %130 = vector.extract_strided_slice %108 {offsets = [0, 256], sizes = [2, 128], strides = [1, 1]} : vector<2x384xf32> to vector<2x128xf32>
    %131 = vector.broadcast %24 : vector<1x128xf32> to vector<2x128xf32>
    %132 = arith.addf %130, %131 : vector<2x128xf32>
    %133 = arith.mulf %118, %132 : vector<2x128xf32>
    %134 = arith.addf %129, %133 : vector<2x128xf32>
    %135 = math.tanh %134 : vector<2x128xf32>
    %136 = arith.subf %99, %135 : vector<2x128xf32>
    %137 = arith.mulf %128, %136 : vector<2x128xf32>
    %138 = arith.addf %135, %137 : vector<2x128xf32>
    %c0_47 = arith.constant 0 : index
    %139 = arith.index_cast %c2_i32 : i32 to index
    %c0_48 = arith.constant 0 : index
    %140 = vector.load %arg7[%c0_47, %139, %c0_48] : memref<2x8x128xf32, #tpu.memory_space<vmem>>, vector<2x1x128xf32>
    %141 = vector.shape_cast %140 : vector<2x1x128xf32> to vector<2x128xf32>
    %142 = vector.shape_cast %138 : vector<2x128xf32> to vector<2x1x128xf32>
    tpu.vector_store %arg7[%c0_47, %139, %c0_48], %142 {strides = array<i32>} : memref<2x8x128xf32, #tpu.memory_space<vmem>>, vector<2x1x128xf32>,
    %c3_i32 = arith.constant 3 : i32
    %143 = arith.index_cast %c3_i32 : i32 to index
    %c0_49 = arith.constant 0 : index
    %c0_50 = arith.constant 0 : index
    %144 = vector.load %arg9[%143, %c0_49, %c0_50] : memref<8x2x384xf32, #tpu.memory_space<vmem>>, vector<1x2x384xf32>
    %145 = vector.shape_cast %144 : vector<1x2x384xf32> to vector<2x384xf32>
    %146 = arith.truncf %138 : vector<2x128xf32> to vector<2x128xbf16>
    %cst_51 = arith.constant dense<0.000000e+00> : vector<2x384xf32>
    %147 = tpu.matmul %146, %23, %cst_51 {dimension_numbers = #tpu.dot_dimension_numbers<[1], [0], [0], [1], [0, 0, 1, 1], [], []>} : vector<2x128xbf16>, vector<128x384xbf16>, vector<2x384xf32> -> vector<2x384xf32>
    %148 = vector.extract_strided_slice %145 {offsets = [0, 0], sizes = [2, 128], strides = [1, 1]} : vector<2x384xf32> to vector<2x128xf32>
    %149 = vector.extract_strided_slice %147 {offsets = [0, 0], sizes = [2, 128], strides = [1, 1]} : vector<2x384xf32> to vector<2x128xf32>
    %150 = arith.addf %148, %149 : vector<2x128xf32>
    %cst_52 = arith.constant 5.000000e-01 : f32
    %151 = vector.broadcast %cst_52 : f32 to vector<2x128xf32>
    %152 = arith.mulf %151, %150 : vector<2x128xf32>
    %153 = math.tanh %152 : vector<2x128xf32>
    %cst_53 = arith.constant 5.000000e-01 : f32
    %154 = vector.broadcast %cst_53 : f32 to vector<2x128xf32>
    %155 = arith.mulf %154, %153 : vector<2x128xf32>
    %cst_54 = arith.constant 5.000000e-01 : f32
    %156 = vector.broadcast %cst_54 : f32 to vector<2x128xf32>
    %157 = arith.addf %155, %156 : vector<2x128xf32>
    %158 = vector.extract_strided_slice %145 {offsets = [0, 128], sizes = [2, 128], strides = [1, 1]} : vector<2x384xf32> to vector<2x128xf32>
    %159 = vector.extract_strided_slice %147 {offsets = [0, 128], sizes = [2, 128], strides = [1, 1]} : vector<2x384xf32> to vector<2x128xf32>
    %160 = arith.addf %158, %159 : vector<2x128xf32>
    %cst_55 = arith.constant 5.000000e-01 : f32
    %161 = vector.broadcast %cst_55 : f32 to vector<2x128xf32>
    %162 = arith.mulf %161, %160 : vector<2x128xf32>
    %163 = math.tanh %162 : vector<2x128xf32>
    %cst_56 = arith.constant 5.000000e-01 : f32
    %164 = vector.broadcast %cst_56 : f32 to vector<2x128xf32>
    %165 = arith.mulf %164, %163 : vector<2x128xf32>
    %cst_57 = arith.constant 5.000000e-01 : f32
    %166 = vector.broadcast %cst_57 : f32 to vector<2x128xf32>
    %167 = arith.addf %165, %166 : vector<2x128xf32>
    %168 = vector.extract_strided_slice %145 {offsets = [0, 256], sizes = [2, 128], strides = [1, 1]} : vector<2x384xf32> to vector<2x128xf32>
    %169 = vector.extract_strided_slice %147 {offsets = [0, 256], sizes = [2, 128], strides = [1, 1]} : vector<2x384xf32> to vector<2x128xf32>
    %170 = vector.broadcast %24 : vector<1x128xf32> to vector<2x128xf32>
    %171 = arith.addf %169, %170 : vector<2x128xf32>
    %172 = arith.mulf %157, %171 : vector<2x128xf32>
    %173 = arith.addf %168, %172 : vector<2x128xf32>
    %174 = math.tanh %173 : vector<2x128xf32>
    %175 = arith.subf %138, %174 : vector<2x128xf32>
    %176 = arith.mulf %167, %175 : vector<2x128xf32>
    %177 = arith.addf %174, %176 : vector<2x128xf32>
    %c0_58 = arith.constant 0 : index
    %178 = arith.index_cast %c3_i32 : i32 to index
    %c0_59 = arith.constant 0 : index
    %179 = vector.load %arg7[%c0_58, %178, %c0_59] : memref<2x8x128xf32, #tpu.memory_space<vmem>>, vector<2x1x128xf32>
    %180 = vector.shape_cast %179 : vector<2x1x128xf32> to vector<2x128xf32>
    %181 = vector.shape_cast %177 : vector<2x128xf32> to vector<2x1x128xf32>
    tpu.vector_store %arg7[%c0_58, %178, %c0_59], %181 {strides = array<i32>} : memref<2x8x128xf32, #tpu.memory_space<vmem>>, vector<2x1x128xf32>,
    %c4_i32 = arith.constant 4 : i32
    %182 = arith.index_cast %c4_i32 : i32 to index
    %c0_60 = arith.constant 0 : index
    %c0_61 = arith.constant 0 : index
    %183 = vector.load %arg9[%182, %c0_60, %c0_61] : memref<8x2x384xf32, #tpu.memory_space<vmem>>, vector<1x2x384xf32>
    %184 = vector.shape_cast %183 : vector<1x2x384xf32> to vector<2x384xf32>
    %185 = arith.truncf %177 : vector<2x128xf32> to vector<2x128xbf16>
    %cst_62 = arith.constant dense<0.000000e+00> : vector<2x384xf32>
    %186 = tpu.matmul %185, %23, %cst_62 {dimension_numbers = #tpu.dot_dimension_numbers<[1], [0], [0], [1], [0, 0, 1, 1], [], []>} : vector<2x128xbf16>, vector<128x384xbf16>, vector<2x384xf32> -> vector<2x384xf32>
    %187 = vector.extract_strided_slice %184 {offsets = [0, 0], sizes = [2, 128], strides = [1, 1]} : vector<2x384xf32> to vector<2x128xf32>
    %188 = vector.extract_strided_slice %186 {offsets = [0, 0], sizes = [2, 128], strides = [1, 1]} : vector<2x384xf32> to vector<2x128xf32>
    %189 = arith.addf %187, %188 : vector<2x128xf32>
    %cst_63 = arith.constant 5.000000e-01 : f32
    %190 = vector.broadcast %cst_63 : f32 to vector<2x128xf32>
    %191 = arith.mulf %190, %189 : vector<2x128xf32>
    %192 = math.tanh %191 : vector<2x128xf32>
    %cst_64 = arith.constant 5.000000e-01 : f32
    %193 = vector.broadcast %cst_64 : f32 to vector<2x128xf32>
    %194 = arith.mulf %193, %192 : vector<2x128xf32>
    %cst_65 = arith.constant 5.000000e-01 : f32
    %195 = vector.broadcast %cst_65 : f32 to vector<2x128xf32>
    %196 = arith.addf %194, %195 : vector<2x128xf32>
    %197 = vector.extract_strided_slice %184 {offsets = [0, 128], sizes = [2, 128], strides = [1, 1]} : vector<2x384xf32> to vector<2x128xf32>
    %198 = vector.extract_strided_slice %186 {offsets = [0, 128], sizes = [2, 128], strides = [1, 1]} : vector<2x384xf32> to vector<2x128xf32>
    %199 = arith.addf %197, %198 : vector<2x128xf32>
    %cst_66 = arith.constant 5.000000e-01 : f32
    %200 = vector.broadcast %cst_66 : f32 to vector<2x128xf32>
    %201 = arith.mulf %200, %199 : vector<2x128xf32>
    %202 = math.tanh %201 : vector<2x128xf32>
    %cst_67 = arith.constant 5.000000e-01 : f32
    %203 = vector.broadcast %cst_67 : f32 to vector<2x128xf32>
    %204 = arith.mulf %203, %202 : vector<2x128xf32>
    %cst_68 = arith.constant 5.000000e-01 : f32
    %205 = vector.broadcast %cst_68 : f32 to vector<2x128xf32>
    %206 = arith.addf %204, %205 : vector<2x128xf32>
    %207 = vector.extract_strided_slice %184 {offsets = [0, 256], sizes = [2, 128], strides = [1, 1]} : vector<2x384xf32> to vector<2x128xf32>
    %208 = vector.extract_strided_slice %186 {offsets = [0, 256], sizes = [2, 128], strides = [1, 1]} : vector<2x384xf32> to vector<2x128xf32>
    %209 = vector.broadcast %24 : vector<1x128xf32> to vector<2x128xf32>
    %210 = arith.addf %208, %209 : vector<2x128xf32>
    %211 = arith.mulf %196, %210 : vector<2x128xf32>
    %212 = arith.addf %207, %211 : vector<2x128xf32>
    %213 = math.tanh %212 : vector<2x128xf32>
    %214 = arith.subf %177, %213 : vector<2x128xf32>
    %215 = arith.mulf %206, %214 : vector<2x128xf32>
    %216 = arith.addf %213, %215 : vector<2x128xf32>
    %c0_69 = arith.constant 0 : index
    %217 = arith.index_cast %c4_i32 : i32 to index
    %c0_70 = arith.constant 0 : index
    %218 = vector.load %arg7[%c0_69, %217, %c0_70] : memref<2x8x128xf32, #tpu.memory_space<vmem>>, vector<2x1x128xf32>
    %219 = vector.shape_cast %218 : vector<2x1x128xf32> to vector<2x128xf32>
    %220 = vector.shape_cast %216 : vector<2x128xf32> to vector<2x1x128xf32>
    tpu.vector_store %arg7[%c0_69, %217, %c0_70], %220 {strides = array<i32>} : memref<2x8x128xf32, #tpu.memory_space<vmem>>, vector<2x1x128xf32>,
    %c5_i32 = arith.constant 5 : i32
    %221 = arith.index_cast %c5_i32 : i32 to index
    %c0_71 = arith.constant 0 : index
    %c0_72 = arith.constant 0 : index
    %222 = vector.load %arg9[%221, %c0_71, %c0_72] : memref<8x2x384xf32, #tpu.memory_space<vmem>>, vector<1x2x384xf32>
    %223 = vector.shape_cast %222 : vector<1x2x384xf32> to vector<2x384xf32>
    %224 = arith.truncf %216 : vector<2x128xf32> to vector<2x128xbf16>
    %cst_73 = arith.constant dense<0.000000e+00> : vector<2x384xf32>
    %225 = tpu.matmul %224, %23, %cst_73 {dimension_numbers = #tpu.dot_dimension_numbers<[1], [0], [0], [1], [0, 0, 1, 1], [], []>} : vector<2x128xbf16>, vector<128x384xbf16>, vector<2x384xf32> -> vector<2x384xf32>
    %226 = vector.extract_strided_slice %223 {offsets = [0, 0], sizes = [2, 128], strides = [1, 1]} : vector<2x384xf32> to vector<2x128xf32>
    %227 = vector.extract_strided_slice %225 {offsets = [0, 0], sizes = [2, 128], strides = [1, 1]} : vector<2x384xf32> to vector<2x128xf32>
    %228 = arith.addf %226, %227 : vector<2x128xf32>
    %cst_74 = arith.constant 5.000000e-01 : f32
    %229 = vector.broadcast %cst_74 : f32 to vector<2x128xf32>
    %230 = arith.mulf %229, %228 : vector<2x128xf32>
    %231 = math.tanh %230 : vector<2x128xf32>
    %cst_75 = arith.constant 5.000000e-01 : f32
    %232 = vector.broadcast %cst_75 : f32 to vector<2x128xf32>
    %233 = arith.mulf %232, %231 : vector<2x128xf32>
    %cst_76 = arith.constant 5.000000e-01 : f32
    %234 = vector.broadcast %cst_76 : f32 to vector<2x128xf32>
    %235 = arith.addf %233, %234 : vector<2x128xf32>
    %236 = vector.extract_strided_slice %223 {offsets = [0, 128], sizes = [2, 128], strides = [1, 1]} : vector<2x384xf32> to vector<2x128xf32>
    %237 = vector.extract_strided_slice %225 {offsets = [0, 128], sizes = [2, 128], strides = [1, 1]} : vector<2x384xf32> to vector<2x128xf32>
    %238 = arith.addf %236, %237 : vector<2x128xf32>
    %cst_77 = arith.constant 5.000000e-01 : f32
    %239 = vector.broadcast %cst_77 : f32 to vector<2x128xf32>
    %240 = arith.mulf %239, %238 : vector<2x128xf32>
    %241 = math.tanh %240 : vector<2x128xf32>
    %cst_78 = arith.constant 5.000000e-01 : f32
    %242 = vector.broadcast %cst_78 : f32 to vector<2x128xf32>
    %243 = arith.mulf %242, %241 : vector<2x128xf32>
    %cst_79 = arith.constant 5.000000e-01 : f32
    %244 = vector.broadcast %cst_79 : f32 to vector<2x128xf32>
    %245 = arith.addf %243, %244 : vector<2x128xf32>
    %246 = vector.extract_strided_slice %223 {offsets = [0, 256], sizes = [2, 128], strides = [1, 1]} : vector<2x384xf32> to vector<2x128xf32>
    %247 = vector.extract_strided_slice %225 {offsets = [0, 256], sizes = [2, 128], strides = [1, 1]} : vector<2x384xf32> to vector<2x128xf32>
    %248 = vector.broadcast %24 : vector<1x128xf32> to vector<2x128xf32>
    %249 = arith.addf %247, %248 : vector<2x128xf32>
    %250 = arith.mulf %235, %249 : vector<2x128xf32>
    %251 = arith.addf %246, %250 : vector<2x128xf32>
    %252 = math.tanh %251 : vector<2x128xf32>
    %253 = arith.subf %216, %252 : vector<2x128xf32>
    %254 = arith.mulf %245, %253 : vector<2x128xf32>
    %255 = arith.addf %252, %254 : vector<2x128xf32>
    %c0_80 = arith.constant 0 : index
    %256 = arith.index_cast %c5_i32 : i32 to index
    %c0_81 = arith.constant 0 : index
    %257 = vector.load %arg7[%c0_80, %256, %c0_81] : memref<2x8x128xf32, #tpu.memory_space<vmem>>, vector<2x1x128xf32>
    %258 = vector.shape_cast %257 : vector<2x1x128xf32> to vector<2x128xf32>
    %259 = vector.shape_cast %255 : vector<2x128xf32> to vector<2x1x128xf32>
    tpu.vector_store %arg7[%c0_80, %256, %c0_81], %259 {strides = array<i32>} : memref<2x8x128xf32, #tpu.memory_space<vmem>>, vector<2x1x128xf32>,
    %c6_i32 = arith.constant 6 : i32
    %260 = arith.index_cast %c6_i32 : i32 to index
    %c0_82 = arith.constant 0 : index
    %c0_83 = arith.constant 0 : index
    %261 = vector.load %arg9[%260, %c0_82, %c0_83] : memref<8x2x384xf32, #tpu.memory_space<vmem>>, vector<1x2x384xf32>
    %262 = vector.shape_cast %261 : vector<1x2x384xf32> to vector<2x384xf32>
    %263 = arith.truncf %255 : vector<2x128xf32> to vector<2x128xbf16>
    %cst_84 = arith.constant dense<0.000000e+00> : vector<2x384xf32>
    %264 = tpu.matmul %263, %23, %cst_84 {dimension_numbers = #tpu.dot_dimension_numbers<[1], [0], [0], [1], [0, 0, 1, 1], [], []>} : vector<2x128xbf16>, vector<128x384xbf16>, vector<2x384xf32> -> vector<2x384xf32>
    %265 = vector.extract_strided_slice %262 {offsets = [0, 0], sizes = [2, 128], strides = [1, 1]} : vector<2x384xf32> to vector<2x128xf32>
    %266 = vector.extract_strided_slice %264 {offsets = [0, 0], sizes = [2, 128], strides = [1, 1]} : vector<2x384xf32> to vector<2x128xf32>
    %267 = arith.addf %265, %266 : vector<2x128xf32>
    %cst_85 = arith.constant 5.000000e-01 : f32
    %268 = vector.broadcast %cst_85 : f32 to vector<2x128xf32>
    %269 = arith.mulf %268, %267 : vector<2x128xf32>
    %270 = math.tanh %269 : vector<2x128xf32>
    %cst_86 = arith.constant 5.000000e-01 : f32
    %271 = vector.broadcast %cst_86 : f32 to vector<2x128xf32>
    %272 = arith.mulf %271, %270 : vector<2x128xf32>
    %cst_87 = arith.constant 5.000000e-01 : f32
    %273 = vector.broadcast %cst_87 : f32 to vector<2x128xf32>
    %274 = arith.addf %272, %273 : vector<2x128xf32>
    %275 = vector.extract_strided_slice %262 {offsets = [0, 128], sizes = [2, 128], strides = [1, 1]} : vector<2x384xf32> to vector<2x128xf32>
    %276 = vector.extract_strided_slice %264 {offsets = [0, 128], sizes = [2, 128], strides = [1, 1]} : vector<2x384xf32> to vector<2x128xf32>
    %277 = arith.addf %275, %276 : vector<2x128xf32>
    %cst_88 = arith.constant 5.000000e-01 : f32
    %278 = vector.broadcast %cst_88 : f32 to vector<2x128xf32>
    %279 = arith.mulf %278, %277 : vector<2x128xf32>
    %280 = math.tanh %279 : vector<2x128xf32>
    %cst_89 = arith.constant 5.000000e-01 : f32
    %281 = vector.broadcast %cst_89 : f32 to vector<2x128xf32>
    %282 = arith.mulf %281, %280 : vector<2x128xf32>
    %cst_90 = arith.constant 5.000000e-01 : f32
    %283 = vector.broadcast %cst_90 : f32 to vector<2x128xf32>
    %284 = arith.addf %282, %283 : vector<2x128xf32>
    %285 = vector.extract_strided_slice %262 {offsets = [0, 256], sizes = [2, 128], strides = [1, 1]} : vector<2x384xf32> to vector<2x128xf32>
    %286 = vector.extract_strided_slice %264 {offsets = [0, 256], sizes = [2, 128], strides = [1, 1]} : vector<2x384xf32> to vector<2x128xf32>
    %287 = vector.broadcast %24 : vector<1x128xf32> to vector<2x128xf32>
    %288 = arith.addf %286, %287 : vector<2x128xf32>
    %289 = arith.mulf %274, %288 : vector<2x128xf32>
    %290 = arith.addf %285, %289 : vector<2x128xf32>
    %291 = math.tanh %290 : vector<2x128xf32>
    %292 = arith.subf %255, %291 : vector<2x128xf32>
    %293 = arith.mulf %284, %292 : vector<2x128xf32>
    %294 = arith.addf %291, %293 : vector<2x128xf32>
    %c0_91 = arith.constant 0 : index
    %295 = arith.index_cast %c6_i32 : i32 to index
    %c0_92 = arith.constant 0 : index
    %296 = vector.load %arg7[%c0_91, %295, %c0_92] : memref<2x8x128xf32, #tpu.memory_space<vmem>>, vector<2x1x128xf32>
    %297 = vector.shape_cast %296 : vector<2x1x128xf32> to vector<2x128xf32>
    %298 = vector.shape_cast %294 : vector<2x128xf32> to vector<2x1x128xf32>
    tpu.vector_store %arg7[%c0_91, %295, %c0_92], %298 {strides = array<i32>} : memref<2x8x128xf32, #tpu.memory_space<vmem>>, vector<2x1x128xf32>,
    %c7_i32 = arith.constant 7 : i32
    %299 = arith.index_cast %c7_i32 : i32 to index
    %c0_93 = arith.constant 0 : index
    %c0_94 = arith.constant 0 : index
    %300 = vector.load %arg9[%299, %c0_93, %c0_94] : memref<8x2x384xf32, #tpu.memory_space<vmem>>, vector<1x2x384xf32>
    %301 = vector.shape_cast %300 : vector<1x2x384xf32> to vector<2x384xf32>
    %302 = arith.truncf %294 : vector<2x128xf32> to vector<2x128xbf16>
    %cst_95 = arith.constant dense<0.000000e+00> : vector<2x384xf32>
    %303 = tpu.matmul %302, %23, %cst_95 {dimension_numbers = #tpu.dot_dimension_numbers<[1], [0], [0], [1], [0, 0, 1, 1], [], []>} : vector<2x128xbf16>, vector<128x384xbf16>, vector<2x384xf32> -> vector<2x384xf32>
    %304 = vector.extract_strided_slice %301 {offsets = [0, 0], sizes = [2, 128], strides = [1, 1]} : vector<2x384xf32> to vector<2x128xf32>
    %305 = vector.extract_strided_slice %303 {offsets = [0, 0], sizes = [2, 128], strides = [1, 1]} : vector<2x384xf32> to vector<2x128xf32>
    %306 = arith.addf %304, %305 : vector<2x128xf32>
    %cst_96 = arith.constant 5.000000e-01 : f32
    %307 = vector.broadcast %cst_96 : f32 to vector<2x128xf32>
    %308 = arith.mulf %307, %306 : vector<2x128xf32>
    %309 = math.tanh %308 : vector<2x128xf32>
    %cst_97 = arith.constant 5.000000e-01 : f32
    %310 = vector.broadcast %cst_97 : f32 to vector<2x128xf32>
    %311 = arith.mulf %310, %309 : vector<2x128xf32>
    %cst_98 = arith.constant 5.000000e-01 : f32
    %312 = vector.broadcast %cst_98 : f32 to vector<2x128xf32>
    %313 = arith.addf %311, %312 : vector<2x128xf32>
    %314 = vector.extract_strided_slice %301 {offsets = [0, 128], sizes = [2, 128], strides = [1, 1]} : vector<2x384xf32> to vector<2x128xf32>
    %315 = vector.extract_strided_slice %303 {offsets = [0, 128], sizes = [2, 128], strides = [1, 1]} : vector<2x384xf32> to vector<2x128xf32>
    %316 = arith.addf %314, %315 : vector<2x128xf32>
    %cst_99 = arith.constant 5.000000e-01 : f32
    %317 = vector.broadcast %cst_99 : f32 to vector<2x128xf32>
    %318 = arith.mulf %317, %316 : vector<2x128xf32>
    %319 = math.tanh %318 : vector<2x128xf32>
    %cst_100 = arith.constant 5.000000e-01 : f32
    %320 = vector.broadcast %cst_100 : f32 to vector<2x128xf32>
    %321 = arith.mulf %320, %319 : vector<2x128xf32>
    %cst_101 = arith.constant 5.000000e-01 : f32
    %322 = vector.broadcast %cst_101 : f32 to vector<2x128xf32>
    %323 = arith.addf %321, %322 : vector<2x128xf32>
    %324 = vector.extract_strided_slice %301 {offsets = [0, 256], sizes = [2, 128], strides = [1, 1]} : vector<2x384xf32> to vector<2x128xf32>
    %325 = vector.extract_strided_slice %303 {offsets = [0, 256], sizes = [2, 128], strides = [1, 1]} : vector<2x384xf32> to vector<2x128xf32>
    %326 = vector.broadcast %24 : vector<1x128xf32> to vector<2x128xf32>
    %327 = arith.addf %325, %326 : vector<2x128xf32>
    %328 = arith.mulf %313, %327 : vector<2x128xf32>
    %329 = arith.addf %324, %328 : vector<2x128xf32>
    %330 = math.tanh %329 : vector<2x128xf32>
    %331 = arith.subf %294, %330 : vector<2x128xf32>
    %332 = arith.mulf %323, %331 : vector<2x128xf32>
    %333 = arith.addf %330, %332 : vector<2x128xf32>
    %c0_102 = arith.constant 0 : index
    %334 = arith.index_cast %c7_i32 : i32 to index
    %c0_103 = arith.constant 0 : index
    %335 = vector.load %arg7[%c0_102, %334, %c0_103] : memref<2x8x128xf32, #tpu.memory_space<vmem>>, vector<2x1x128xf32>
    %336 = vector.shape_cast %335 : vector<2x1x128xf32> to vector<2x128xf32>
    %337 = vector.shape_cast %333 : vector<2x128xf32> to vector<2x1x128xf32>
    tpu.vector_store %arg7[%c0_102, %334, %c0_103], %337 {strides = array<i32>} : memref<2x8x128xf32, #tpu.memory_space<vmem>>, vector<2x1x128xf32>,
    %c8_i32 = arith.constant 8 : i32
    %c0_104 = arith.constant 0 : index
    %c0_105 = arith.constant 0 : index
    %338 = vector.load %arg10[%c0_104, %c0_105] : memref<2x128xf32, #tpu.memory_space<vmem>>, vector<2x128xf32>
    tpu.vector_store %arg10[%c0_104, %c0_105], %333 {strides = array<i32>} : memref<2x128xf32, #tpu.memory_space<vmem>>, vector<2x128xf32>,
    %c0_i32_106 = arith.constant 0 : i32
    %339 = arith.cmpi eq, %arg1, %c0_i32_106 : i32
    %340 = arith.extui %339 : i1 to i32
    %c0_i32_107 = arith.constant 0 : i32
    %341 = arith.cmpi ne, %340, %c0_i32_107 : i32
    scf.if %341 {
      %c0_108 = arith.constant 0 : index
      %c0_109 = arith.constant 0 : index
      %342 = vector.load %arg8[%c0_108, %c0_109] : memref<2x128xf32, #tpu.memory_space<vmem>>, vector<2x128xf32>
      tpu.vector_store %arg8[%c0_108, %c0_109], %333 {strides = array<i32>} : memref<2x128xf32, #tpu.memory_space<vmem>>, vector<2x128xf32>,
    } else {
    }
    return
  }
  func.func @transform_0(%arg0: i32, %arg1: i32) -> (i32, i32, i32) {
    %c0_i32 = arith.constant 0 : i32
    %c0_i32_0 = arith.constant 0 : i32
    return %arg1, %arg0, %c0_i32 : i32, i32, i32
  }
  func.func @transform_1(%arg0: i32, %arg1: i32) -> (i32, i32) {
    %c0_i32 = arith.constant 0 : i32
    %c0_i32_0 = arith.constant 0 : i32
    %c0_i32_1 = arith.constant 0 : i32
    return %c0_i32, %c0_i32_0 : i32, i32
  }
  func.func @transform_2(%arg0: i32, %arg1: i32) -> (i32, i32) {
    %c0_i32 = arith.constant 0 : i32
    %c0_i32_0 = arith.constant 0 : i32
    %c0_i32_1 = arith.constant 0 : i32
    return %c0_i32, %c0_i32_0 : i32, i32
  }
  func.func @transform_3(%arg0: i32, %arg1: i32) -> (i32, i32) {
    %c0_i32 = arith.constant 0 : i32
    %c0_i32_0 = arith.constant 0 : i32
    %c0_i32_1 = arith.constant 0 : i32
    return %c0_i32, %c0_i32_0 : i32, i32
  }
  func.func @transform_4(%arg0: i32, %arg1: i32) -> (i32, i32) {
    %c0_i32 = arith.constant 0 : i32
    %c0_i32_0 = arith.constant 0 : i32
    %c0_i32_1 = arith.constant 0 : i32
    return %c0_i32, %c0_i32_0 : i32, i32
  }
  func.func @transform_5(%arg0: i32, %arg1: i32) -> (i32, i32, i32) {
    %c0_i32 = arith.constant 0 : i32
    %c0_i32_0 = arith.constant 0 : i32
    return %arg0, %arg1, %c0_i32 : i32, i32, i32
  }
  func.func @transform_6(%arg0: i32, %arg1: i32) -> (i32, i32) {
    %c0_i32 = arith.constant 0 : i32
    %c0_i32_0 = arith.constant 0 : i32
    return %arg0, %c0_i32 : i32, i32
  }
}

</mosaic_0001>

<bundles_post_ra>
// kernel: encoder_forward.1
= control target key start
LH: loop header
LB: loop body
LE: loop exit
PB: predicated region body
PF: predicated region fallthrough
CT: control target
= control target key end

     0   :  { %12 = vsyncpa [#allocation5], 0  ;;  %v2033_v2 = vmov 0.0   ;;  %v2034_v3 = vmov 0   ;;  %vm2035_vm0 = vmmov 0   ;;  %s2851_s0 = inlined_call_operand.vmem [shape: f32[8,2,2], index: 0, kind: input, shape index: {}]   ;;  %s2852_s1 = inlined_call_operand.vmem [shape: f32[2,384], index: 1, kind: input, shape index: {}]   ;;  %s2853_s2 = inlined_call_operand.vmem [shape: f32[1,384], index: 2, kind: input, shape index: {}]   ;;  %s2854_s3 = inlined_call_operand.vmem [shape: bf16[128,384], index: 3, kind: input, shape index: {}]   ;;  %s2855_s4 = inlined_call_operand.vmem [shape: f32[1,128], index: 4, kind: input, shape index: {}]   ;;  %s2856_s5 = inlined_call_operand.hbm [shape: f32[2,8,128], index: 5, kind: output, shape index: {0}]   ;;  %s2857_s6 = inlined_call_operand.hbm [shape: f32[2,128], index: 6, kind: output, shape index: {1}]  }
   0x1   :  { %v2081_v0 = vld [vmem:[%s2854_s3 + $0x4] ss:$12 sps:$4 sm:$0xff]   ;;  %v2086_v1 = vld [vmem:[%s2854_s3] ss:$12 sps:$4 sm:$0xff]   ;;  %1706 = vmatprep.subr.bf16.mxu1 %v2033_v2  ;;  %29 = vst [vmem:[#allocation3] sm:$0x3] %v2033_v2  ;;  %643 = vmatprep.mubr.bf16.mxu0 %v2034_v3 }
   0x2   :  { %611 = vmatprep.subr.bf16.mxu0 %v2081_v0  ;;  %v2095_v4 = vld [vmem:[%s2854_s3 + $0x1c] ss:$12 sps:$4 sm:$0xff]   ;;  %1722 = vmatprep.mubr.msk.bf16.mxu1 %vm2035_vm0, %v2033_v2  ;;  %v2103_v5 = vld [vmem:[%s2854_s3 + $0x18] ss:$12 sps:$4 sm:$0xff]   ;;  %v2110_v6 = vld [vmem:[%s2854_s3 + $0x34] ss:$12 sps:$4 sm:$0xff]  }
   0x3   :  { %612 = vmatpush1.bf16.msra.mxu0 %v2086_v1  ;;  %1878 = vset.pattern.permute.xlu1 %v2034_v3  ;;  %v2116_v7 = vld [vmem:[%s2854_s3 + $0x8] ss:$12 sps:$4 sm:$0xff]   ;;  %v2122_v8 = vld [vmem:[%s2854_s3 + $0x30] ss:$12 sps:$4 sm:$0xff]   ;;  %v2127_v9 = vld [vmem:[%s2854_s3 + $0x4c] ss:$12 sps:$4 sm:$0xff]  }
   0x4   :  { %613 = vmatprep.subr.bf16.mxu0 %v2095_v4  ;;  %1876 = vset.pattern.permute.xlu0 %v2034_v3  ;;  %v2134_v10 = vld [vmem:[%s2854_s3 + $0x20] ss:$12 sps:$4 sm:$0xff]   ;;  %v2140_v11 = vld [vmem:[%s2854_s3 + $0x48] ss:$12 sps:$4 sm:$0xff]   ;;  %v2146_v12 = vld [vmem:[%s2854_s3 + $0x64] ss:$12 sps:$4 sm:$0xff]  }
   0x5   :  { %1707 = vmatpush3.bf16.msra.mxu1 %v2116_v7  ;;  %v2153_v13 = vld [vmem:[%s2854_s3 + $0x38] ss:$12 sps:$4 sm:$0xff]   ;;  %v2160_v14 = vld [vmem:[%s2854_s3 + $0x60] ss:$12 sps:$4 sm:$0xff]   ;;  %v2165_v15 = vld [vmem:[%s2854_s3 + $0x7c] ss:$12 sps:$4 sm:$0xff]  }
   0x6   :  { %1708 = vmatprep.subr.bf16.mxu1 %v2033_v2  ;;  %v2172_v16 = vld [vmem:[%s2854_s3 + $0x50] ss:$12 sps:$4 sm:$0xff]   ;;  %v2179_v17 = vld [vmem:[%s2854_s3 + $0x78] ss:$12 sps:$4 sm:$0xff]   ;;  %v31_v18 = vld [vmem:[%s2851_s0 + $0x2] sm:$0x3] }
   0x7   :  { %614 = vmatpush1.bf16.msra.mxu0 %v2103_v5  ;;  %v30_v19 = vld [vmem:[%s2851_s0] sm:$0x3]  ;;  %v2197_v21 = vld [vmem:[%s2854_s3 + $0x68] ss:$12 sps:$4 sm:$0xff]   ;;  %46 = vperm.xlu1 %1878, %v31_v18  }
   0x8   :  { %615 = vmatprep.subr.bf16.mxu0 %v2110_v6  ;;  %v2191_v20 = vld [vmem:[%s2854_s3 + $0x94] ss:$12 sps:$4 sm:$0xff]   ;;  %41 = vperm.xlu0 %1876, %v30_v19  }
   0x9   :  { %1709 = vmatpush3.bf16.msra.mxu1 %v2134_v10 }
   0xa   :  { %1710 = vmatprep.subr.bf16.mxu1 %v2033_v2 }
   0xb   :  { %616 = vmatpush1.bf16.msra.mxu0 %v2122_v8 }
   0xc   :  { %617 = vmatprep.subr.bf16.mxu0 %v2127_v9 }
   0xd   :  { %1711 = vmatpush3.bf16.msra.mxu1 %v2153_v13 }
   0xe   :  { %1712 = vmatprep.subr.bf16.mxu1 %v2033_v2 }
   0xf   :  { %618 = vmatpush1.bf16.msra.mxu0 %v2140_v11 }
  0x10   :  { %619 = vmatprep.subr.bf16.mxu0 %v2146_v12 }
  0x11   :  { %1713 = vmatpush3.bf16.msra.mxu1 %v2172_v16 }
  0x12   :  { %1714 = vmatprep.subr.bf16.mxu1 %v2033_v2 }
  0x13   :  { %620 = vmatpush1.bf16.msra.mxu0 %v2160_v14 }
  0x14   :  { %621 = vmatprep.subr.bf16.mxu0 %v2165_v15 }
  0x15   :  { %13 = vsyncpa [#allocation7], 0  ;;  %v2204_v22 = vld [vmem:[%s2854_s3 + $0x90] ss:$12 sps:$4 sm:$0xff]   ;;  %v2210_v23 = vld [vmem:[%s2854_s3 + $0xac] ss:$12 sps:$4 sm:$0xff]   ;;  %1715 = vmatpush3.bf16.msra.mxu1 %v2197_v21  ;;  %v80_v37 = vlaneseq }
  0x16   :  { %v2216_v24 = vld [vmem:[%s2854_s3 + $0x80] ss:$12 sps:$4 sm:$0xff]   ;;  %1716 = vmatprep.subr.bf16.mxu1 %v2033_v2  ;;  %v2036_v25 = vmov 1   ;;  %v2223_v26 = vld [vmem:[%s2854_s3 + $0xa8] ss:$12 sps:$4 sm:$0xff]   ;;  %s2040_s12 = smov [#allocation4]  }
  0x17   :  { %622 = vmatpush1.bf16.msra.mxu0 %v2179_v17  ;;  %1879 = vset.pattern.permute.xlu1 %v2036_v25  ;;  %v2225_v27 = vld [vmem:[#allocation3] sm:$0x3]  ;;  %v2232_v28 = vld [vmem:[%s2854_s3 + $0x98] ss:$12 sps:$4 sm:$0xff]   ;;  %v34_v33 = vld [vmem:[%s2851_s0 + $0x8] sm:$0x3] }
  0x18   :  { %623 = vmatprep.subr.bf16.mxu0 %v2191_v20  ;;  %136 = vperm.xlu1 %1879, %v31_v18   ;;  %v32_v29 = vld [vmem:[%s2851_s0 + $0x4] sm:$0x3]  ;;  %v482_v30 = vpack.c.bf16 %v2225_v27, %v2225_v27  ;;  %v2246_v31 = vld [vmem:[%s2854_s3 + $0xb0] ss:$12 sps:$4 sm:$0xff]   ;;  %v33_v32 = vld [vmem:[%s2851_s0 + $0x6] sm:$0x3] }
  0x19   :  { %1877 = vset.pattern.permute.xlu0 %v2036_v25  ;;  %1717 = vmatpush3.bf16.msra.mxu1 %v2216_v24  ;;  %v35_v34 = vld [vmem:[%s2851_s0 + $0xa] sm:$0x3]  ;;  %v36_v35 = vld [vmem:[%s2851_s0 + $0xc] sm:$0x3]  ;;  %v37_v36 = vld [vmem:[%s2851_s0 + $0xe] sm:$0x3] }
  0x1a   :  { %132 = vperm.xlu0 %1877, %v30_v19   ;;  %1718 = vmatprep.subr.bf16.mxu1 %v2033_v2  ;;  %v2302_v38 = vshrl.u32 %v80_v37, 7  ;;  %v38_v42 = vld [vmem:[%s2852_s1] sm:$0x3f]  ;;  %v2037_v58 = vmov 1983009808   ;;  %s1576_s0 = sshll.u32 %s2040_s12, 4  ;;  %s2820_s0 = int_to_ptr.vmem [resolvable:$true] %s1576_s0 }
  0x1b   :  { %624 = vmatpush1.bf16.msra.mxu0 %v2204_v22  ;;  %v238_v57 = vld [vmem:[%s2853_s2] sm:$0x7]  ;;  %v305_v59 = vunpack.c.l.s4 %v2037_v58 }
  0x1c   :  { %625 = vmatprep.subr.bf16.mxu0 %v2210_v23  ;;  %1880 = vset.pattern.permute.xlu1 %v2034_v3  ;;  %v82_v39 = vsub.s32 0, %v2302_v38  ;;  %v86_v40 = vsub.s32 2, %v2302_v38  ;;  %v90_v41 = vsub.s32 4, %v2302_v38  ;;  %v165_v43 = vsub.s32 1, %v2302_v38 }
  0x1d   :  { %51 = vperm.xlu1 %1880, %v32_v29   ;;  %1719 = vmatpush3.bf16.msra.mxu1 %v2232_v28  ;;  %v169_v44 = vsub.s32 3, %v2302_v38  ;;  %v173_v45 = vsub.s32 5, %v2302_v38 }
  0x1e   :  { %140 = vperm.xlu0 %1877, %v32_v29   ;;  %1720 = vmatprep.subr.bf16.mxu1 %v2033_v2  ;;  %v83_v46 = vrot.slane %v38_v42, %v82_v39  ;;  %v87_v47 = vrot.slane %v38_v42, %v86_v40  ;;  %v91_v48 = vrot.slane %v38_v42, %v90_v41 }
  0x1f   :  { %626 = vmatpush1.bf16.msra.mxu0 %v2223_v26  ;;  %v166_v49 = vrot.slane %v38_v42, %v165_v43  ;;  %v170_v50 = vrot.slane %v38_v42, %v169_v44  ;;  %v174_v51 = vrot.slane %v38_v42, %v173_v45  ;;  %v2331_v25 = vrot.slane %v238_v57, %v82_v39 }
  0x20   :  { %736 = vmatprep.subr.bf16.mxu0 %v2081_v0  ;;  %v2313_v53 = vrot.slane %v83_v46, %v82_v39  ;;  %v2315_v54 = vrot.slane %v87_v47, %v82_v39  ;;  %v2317_v55 = vrot.slane %v91_v48, %v82_v39  ;;  %v2341_v44 = vrot.slane %v238_v57, %v165_v43 }
  0x21   :  { %56 = vperm.xlu1 %1880, %v33_v32   ;;  %1721 = vmatpush3.bf16.msra.mxu1 %v2246_v31  ;;  %v2322_v60 = vrot.slane %v166_v49, %v165_v43  ;;  %v2324_v61 = vrot.slane %v170_v50, %v165_v43  ;;  %v2326_v62 = vrot.slane %v174_v51, %v165_v43 }
  0x22   :  { %644 = vmatmul.mubr.bf16.vlgmr.msra.gmra.mrb[0].mxu0 %v482_v30  ;;  %144 = vperm.xlu0 %1877, %v33_v32  }
  0x23   :  { %737 = vmatpush1.bf16.msra.mxu0 %v2086_v1  ;;  %1726 = vmatprep.subr.bf16.mxu1 %v2033_v2 }
  0x24   :  { %738 = vmatprep.subr.bf16.mxu0 %v2095_v4  ;;  %768 = vmatprep.mubr.bf16.mxu0 %v2034_v3 }
  0x25   :  { %1723 = vmatmul.mubr.bf16.vlgmr.msra.gmra.mrb[0].mxu1 %v482_v30  ;;  %61 = vperm.xlu1 %1880, %v34_v33  }
  0x26   :  { %148 = vperm.xlu0 %1877, %v34_v33   ;;  %1727 = vmatpush3.bf16.msra.mxu1 %v2116_v7  ;;  %v306_v33 = vunpack.c.0.s8 %v305_v59 }
  0x27   :  { %1728 = vmatprep.subr.bf16.mxu1 %v2033_v2  ;;  %739 = vmatpush1.bf16.msra.mxu0 %v2103_v5 }
  0x28   :  { %740 = vmatprep.subr.bf16.mxu0 %v2110_v6  ;;  %1742 = vmatprep.mubr.msk.bf16.mxu1 %vm2035_vm0, %v2033_v2 }
  0x29   :  { %66 = vperm.xlu1 %1880, %v35_v34  }
  0x2a   :  { %152 = vperm.xlu0 %1877, %v35_v34   ;;  %1729 = vmatpush3.bf16.msra.mxu1 %v2134_v10 }
  0x2b   :  { %1730 = vmatprep.subr.bf16.mxu1 %v2033_v2  ;;  %741 = vmatpush1.bf16.msra.mxu0 %v2122_v8 }
  0x2c   :  { %742 = vmatprep.subr.bf16.mxu0 %v2127_v9 }
  0x2d   :  { %71 = vperm.xlu1 %1880, %v36_v35  }
  0x2e   :  { %156 = vperm.xlu0 %1877, %v36_v35   ;;  %1731 = vmatpush3.bf16.msra.mxu1 %v2153_v13  ;;  %v2336_v35 = vrot.slane %v238_v57, %v86_v40  ;;  %v2347_v40 = vsub.s32 %v306_v33, %v2302_v38 }
  0x2f   :  { %1732 = vmatprep.subr.bf16.mxu1 %v2033_v2  ;;  %743 = vmatpush1.bf16.msra.mxu0 %v2140_v11 }
  0x30   :  { %744 = vmatprep.subr.bf16.mxu0 %v2146_v12 }
  0x31   :  { %76 = vperm.xlu1 %1880, %v37_v36  }
  0x32   :  { %160 = vperm.xlu0 %1877, %v37_v36   ;;  %1733 = vmatpush3.bf16.msra.mxu1 %v2172_v16 }
  0x33   :  { %1734 = vmatprep.subr.bf16.mxu1 %v2033_v2  ;;  %745 = vmatpush1.bf16.msra.mxu0 %v2160_v14 }
  0x34   :  { %746 = vmatprep.subr.bf16.mxu0 %v2165_v15 }
  0x36   :  { %1735 = vmatpush3.bf16.msra.mxu1 %v2197_v21 }
  0x37   :  { %1736 = vmatprep.subr.bf16.mxu1 %v2033_v2  ;;  %747 = vmatpush1.bf16.msra.mxu0 %v2179_v17 }
  0x38   :  { %748 = vmatprep.subr.bf16.mxu0 %v2191_v20 }
  0x3a   :  { %1737 = vmatpush3.bf16.msra.mxu1 %v2216_v24 }
  0x3b   :  { %1738 = vmatprep.subr.bf16.mxu1 %v2033_v2  ;;  %749 = vmatpush1.bf16.msra.mxu0 %v2204_v22 }
  0x3c   :  { %750 = vmatprep.subr.bf16.mxu0 %v2210_v23 }
  0x3e   :  { %1739 = vmatpush3.bf16.msra.mxu1 %v2232_v28 }
  0x3f   :  { %1740 = vmatprep.subr.bf16.mxu1 %v2033_v2  ;;  %751 = vmatpush1.bf16.msra.mxu0 %v2223_v26 }
  0x40   :  { %855 = vmatprep.subr.bf16.mxu0 %v2081_v0 }
  0x42   :  { %1741 = vmatpush3.bf16.msra.mxu1 %v2246_v31 }
  0x43   :  { %1746 = vmatprep.subr.bf16.mxu1 %v2033_v2 }
  0x86   :  { %v47_v52 = vpop.permute.xlu1 %46 }
  0x87   :  { %v42_v56 = vpop.permute.xlu0 %41  ;;  %v110_v63 = vmul.f32 %v2313_v53, %v47_v52  ;;  %v111_v18 = vmul.f32 %v2315_v54, %v47_v52  ;;  %v112_v19 = vmul.f32 %v2317_v55, %v47_v52 }
  0x88   :  { %v107_v29 = vmul.f32 %v2313_v53, %v42_v56  ;;  %v108_v30 = vmul.f32 %v2315_v54, %v42_v56  ;;  %v109_v32 = vmul.f32 %v2317_v55, %v42_v56 }
  0x97   :  { %v137_v34 = vpop.permute.xlu1 %136 }
  0x98   :  { %v193_v36 = vmul.f32 %v2322_v60, %v137_v34  ;;  %v194_v37 = vmul.f32 %v2324_v61, %v137_v34  ;;  %v195_v41 = vmul.f32 %v2326_v62, %v137_v34 }
  0x99   :  { %v133_v42 = vpop.permute.xlu0 %132 }
  0x9a   :  { %v190_v39 = vmul.f32 %v2322_v60, %v133_v42  ;;  %v191_v45 = vmul.f32 %v2324_v61, %v133_v42  ;;  %v192_v46 = vmul.f32 %v2326_v62, %v133_v42  ;;  %v217_v47 = vadd.f32 %v193_v36, %v110_v63 }
  0x9b   :  { %v218_v48 = vadd.f32 %v194_v37, %v111_v18  ;;  %v219_v49 = vadd.f32 %v195_v41, %v112_v19 }
  0x9c   :  { %v214_v50 = vadd.f32 %v190_v39, %v107_v29  ;;  %v215_v51 = vadd.f32 %v191_v45, %v108_v30  ;;  %v216_v52 = vadd.f32 %v192_v46, %v109_v32  ;;  %v258_v56 = vadd.f32 %v2331_v25, %v217_v47  ;;  %v52_v58 = vpop.permute.xlu1 %51 }
  0x9d   :  { %v259_v43 = vadd.f32 %v2341_v44, %v218_v48  ;;  %v260_v57 = vadd.f32 %v2336_v35, %v219_v49  ;;  %v113_v18 = vmul.f32 %v2313_v53, %v52_v58  ;;  %v141_v19 = vpop.permute.xlu0 %140  ;;  %v114_v30 = vmul.f32 %v2315_v54, %v52_v58 }
  0x9e   :  { %v255_v59 = vadd.f32 %v2331_v25, %v214_v50  ;;  %v256_v34 = vadd.f32 %v2341_v44, %v215_v51  ;;  %v257_v63 = vadd.f32 %v2336_v35, %v216_v52  ;;  %v115_v32 = vmul.f32 %v2317_v55, %v52_v58 }
  0x9f   :  { %v319_v33 = vcombine.low %v258_v56, %v259_v43  ;;  %v333_v29 = vrot.slane %v260_v57, %v2347_v40  ;;  %v196_v41 = vmul.f32 %v2322_v60, %v141_v19  ;;  %v197_v42 = vmul.f32 %v2324_v61, %v141_v19 }
  0xa0   :  { %v303_v36 = vcombine.low %v255_v59, %v256_v34  ;;  %v317_v37 = vrot.slane %v257_v63, %v2347_v40  ;;  %v198_v45 = vmul.f32 %v2326_v62, %v141_v19  ;;  %v57_v46 = vpop.permute.xlu1 %56 }
  0xa1   :  { %v326_v39 = vrot.slane %v319_v33, %v2347_v40  ;;  %v220_v48 = vadd.f32 %v196_v41, %v113_v18  ;;  %v221_v49 = vadd.f32 %v197_v42, %v114_v30  ;;  %v116_v50 = vmul.f32 %v2313_v53, %v57_v46  ;;  %v145_v51 = vpop.permute.xlu0 %144 }
  0xa2   :  { %v310_v47 = vrot.slane %v303_v36, %v2347_v40  ;;  %v222_v56 = vadd.f32 %v198_v45, %v115_v32  ;;  %v117_v43 = vmul.f32 %v2315_v54, %v57_v46  ;;  %v118_v57 = vmul.f32 %v2317_v55, %v57_v46 }
  0xa3   :  { %v334_v52 = vcombine.low %v326_v39, %v333_v29  ;;  %v261_v59 = vadd.f32 %v2331_v25, %v220_v48  ;;  %v262_v34 = vadd.f32 %v2341_v44, %v221_v49  ;;  %v199_v63 = vmul.f32 %v2322_v60, %v145_v51 }
  0xa4   :  { %v318_v58 = vcombine.low %v310_v47, %v317_v37  ;;  %v263_v18 = vadd.f32 %v2336_v35, %v222_v56  ;;  %v200_v19 = vmul.f32 %v2324_v61, %v145_v51  ;;  %v201_v33 = vmul.f32 %v2326_v62, %v145_v51  ;;  %v62_v29 = vpop.permute.xlu1 %61 }
  0xa5   :  { %440 = vst [vmem:[#allocation2 + $0x6] sm:$0x3f] %v334_v52  ;;  %v335_v30 = vcombine.low %v261_v59, %v262_v34  ;;  %v223_v32 = vadd.f32 %v199_v63, %v116_v50  ;;  %v119_v36 = vmul.f32 %v2313_v53, %v62_v29  ;;  %v120_v37 = vmul.f32 %v2315_v54, %v62_v29  ;;  %v149_v41 = vpop.permute.xlu0 %148 }
  0xa6   :  { %439 = vst [vmem:[#allocation2] sm:$0x3f] %v318_v58  ;;  %v349_v42 = vrot.slane %v263_v18, %v2347_v40  ;;  %v224_v39 = vadd.f32 %v200_v19, %v117_v43  ;;  %v225_v45 = vadd.f32 %v201_v33, %v118_v57  ;;  %v121_v46 = vmul.f32 %v2317_v55, %v62_v29 }
  0xa7   :  { %v342_v47 = vrot.slane %v335_v30, %v2347_v40  ;;  %v264_v48 = vadd.f32 %v2331_v25, %v223_v32  ;;  %v202_v49 = vmul.f32 %v2322_v60, %v149_v41  ;;  %v203_v51 = vmul.f32 %v2324_v61, %v149_v41 }
  0xa8   :  { %v265_v50 = vadd.f32 %v2341_v44, %v224_v39  ;;  %v266_v52 = vadd.f32 %v2336_v35, %v225_v45  ;;  %v204_v56 = vmul.f32 %v2326_v62, %v149_v41  ;;  %v67_v58 = vpop.permute.xlu1 %66 }
  0xa9   :  { %v350_v59 = vcombine.low %v342_v47, %v349_v42  ;;  %v226_v43 = vadd.f32 %v202_v49, %v119_v36  ;;  %v227_v57 = vadd.f32 %v203_v51, %v120_v37  ;;  %v122_v34 = vmul.f32 %v2313_v53, %v67_v58  ;;  %v153_v63 = vpop.permute.xlu0 %152 }
  0xaa   :  { %v351_v18 = vcombine.low %v264_v48, %v265_v50  ;;  %v365_v19 = vrot.slane %v266_v52, %v2347_v40  ;;  %v228_v33 = vadd.f32 %v204_v56, %v121_v46  ;;  %v123_v29 = vmul.f32 %v2315_v54, %v67_v58 }
  0xab   :  { %441 = vst [vmem:[#allocation2 + $0xc] sm:$0x3f] %v350_v59  ;;  %v267_v30 = vadd.f32 %v2331_v25, %v226_v43  ;;  %v268_v32 = vadd.f32 %v2341_v44, %v227_v57  ;;  %v124_v41 = vmul.f32 %v2317_v55, %v67_v58  ;;  %v205_v42 = vmul.f32 %v2322_v60, %v153_v63 }
  0xac   :  { %v358_v36 = vrot.slane %v351_v18, %v2347_v40  ;;  %v269_v37 = vadd.f32 %v2336_v35, %v228_v33  ;;  %v206_v39 = vmul.f32 %v2324_v61, %v153_v63  ;;  %v207_v45 = vmul.f32 %v2326_v62, %v153_v63  ;;  %v72_v46 = vpop.permute.xlu1 %71 }
  0xad   :  { %v367_v47 = vcombine.low %v267_v30, %v268_v32  ;;  %v229_v48 = vadd.f32 %v205_v42, %v122_v34  ;;  %v125_v49 = vmul.f32 %v2313_v53, %v72_v46  ;;  %v126_v51 = vmul.f32 %v2315_v54, %v72_v46  ;;  %v157_v50 = vpop.permute.xlu0 %156 }
  0xae   :  { %v366_v52 = vcombine.low %v358_v36, %v365_v19  ;;  %v381_v56 = vrot.slane %v269_v37, %v2347_v40  ;;  %v230_v58 = vadd.f32 %v206_v39, %v123_v29  ;;  %v231_v59 = vadd.f32 %v207_v45, %v124_v41 }
  0xaf   :  { %v374_v43 = vrot.slane %v367_v47, %v2347_v40  ;;  %v270_v57 = vadd.f32 %v2331_v25, %v229_v48  ;;  %v127_v18 = vmul.f32 %v2317_v55, %v72_v46  ;;  %v208_v63 = vmul.f32 %v2322_v60, %v157_v50 }
  0xb0   :  { %442 = vst [vmem:[#allocation2 + $0x12] sm:$0x3f] %v366_v52  ;;  %v271_v34 = vadd.f32 %v2341_v44, %v230_v58  ;;  %v272_v33 = vadd.f32 %v2336_v35, %v231_v59  ;;  %v209_v30 = vmul.f32 %v2324_v61, %v157_v50  ;;  %v210_v19 = vmul.f32 %v2326_v62, %v157_v50  ;;  %v77_v32 = vpop.permute.xlu1 %76 }
  0xb1   :  { %v382_v29 = vcombine.low %v374_v43, %v381_v56  ;;  %v232_v41 = vadd.f32 %v208_v63, %v125_v49  ;;  %v128_v42 = vmul.f32 %v2313_v53, %v77_v32  ;;  %v129_v36 = vmul.f32 %v2315_v54, %v77_v32  ;;  %v161_v37 = vpop.permute.xlu0 %160 }
  0xb2   :  { %v383_v39 = vcombine.low %v270_v57, %v271_v34  ;;  %v397_v45 = vrot.slane %v272_v33, %v2347_v40  ;;  %v233_v46 = vadd.f32 %v209_v30, %v126_v51  ;;  %v234_v47 = vadd.f32 %v210_v19, %v127_v18 }
  0xb3   :  { %443 = vst [vmem:[#allocation2 + $0x18] sm:$0x3f] %v382_v29  ;;  %v273_v48 = vadd.f32 %v2331_v25, %v232_v41  ;;  %v130_v52 = vmul.f32 %v2317_v55, %v77_v32  ;;  %v211_v50 = vmul.f32 %v2322_v60, %v161_v37  ;;  %v212_v56 = vmul.f32 %v2324_v61, %v161_v37  ;;  %v481_v29 = vld [vmem:[#allocation2] sm:$0x3f] }
  0xb4   :  { %v390_v49 = vrot.slane %v383_v39, %v2347_v40  ;;  %v274_v53 = vadd.f32 %v2341_v44, %v233_v46  ;;  %v275_v54 = vadd.f32 %v2336_v35, %v234_v47  ;;  %v213_v58 = vmul.f32 %v2326_v62, %v161_v37 }
  0xb5   :  { %v235_v59 = vadd.f32 %v211_v50, %v128_v42  ;;  %v236_v51 = vadd.f32 %v212_v56, %v129_v36  ;;  %v698_v46 = vrot.slane %v481_v29, 2 }
  0xb6   :  { %v398_v43 = vcombine.low %v390_v49, %v397_v45  ;;  %v399_v57 = vcombine.low %v273_v48, %v274_v53  ;;  %v413_v18 = vrot.slane %v275_v54, %v2347_v40  ;;  %v237_v63 = vadd.f32 %v213_v58, %v130_v52 }
  0xb7   :  { %v276_v55 = vadd.f32 %v2331_v25, %v235_v59  ;;  %v277_v60 = vadd.f32 %v2341_v44, %v236_v51  ;;  %v713_v54 = vrot.slane %v481_v29, 4 }
  0xb8   :  { %444 = vst [vmem:[#allocation2 + $0x1e] sm:$0x3f] %v398_v43  ;;  %v406_v61 = vrot.slane %v399_v57, %v2347_v40  ;;  %v278_v34 = vadd.f32 %v2336_v35, %v237_v63  ;;  %v2038_v43 = vmov 1966171168  }
  0xb9   :  { %v415_v33 = vcombine.low %v276_v55, %v277_v60  ;;  %v722_v57 = vunpack.c.l.s4 %v2038_v43 }
  0xba   :  { %v414_v30 = vcombine.low %v406_v61, %v413_v18  ;;  %v429_v62 = vrot.slane %v278_v34, %v2347_v40 }
  0xbb   :  { %v422_v19 = vrot.slane %v415_v33, %v2347_v40  ;;  %v2428_v40 = vld [vmem:[%s2855_s4] ss:$0 sm:$0xff]  ;;  %v723_v63 = vunpack.c.0.s8 %v722_v57 }
  0xbc   :  { %445 = vst [vmem:[#allocation2 + $0x24] sm:$0x3f] %v414_v30 }
  0xbd   :  { %v430_v32 = vcombine.low %v422_v19, %v429_v62  ;;  %v2433_v33 = vsub.s32 %v723_v63, %v2302_v38 }
  0xbf   :  { %446 = vst [vmem:[#allocation2 + $0x2a] sm:$0x3f] %v430_v32 }
  0xf5   :  { %v645_v41 = vpop.f32.mrb[0].mxu0 }
  0xf6   :  { %v692_v42 = vadd.f32 %v645_v41, %v481_v29  ;;  %v647_v25 = vpop.f32.mrb[1].mxu0 }
  0xf7   :  { %v649_v36 = vpop.f32.mrb[2].mxu0  ;;  %v700_v48 = vadd.f32 %v698_v46, %v647_v25 }
  0xf8   :  { %v693_v44 = vmul.f32 0.5, %v692_v42  ;;  %v650_v37 = vpop.f32.mrb[3].mxu0  ;;  %v686_v39 = vpop.f32.mrb[0].mxu1 }
  0xf9   :  { %v1724_v45 = vpop.f32.mrb[1].mxu1  ;;  %v701_v52 = vmul.f32 0.5, %v700_v48  ;;  %v711_v49 = vadd.f32 %v2428_v40, %v686_v39 }
  0xfa   :  { %1913 = vtanh.f32 %v693_v44  ;;  %v689_v35 = vpop.f32.mrb[2].mxu1 }
  0xfb   :  { %v1725_v47 = vpop.f32.mrb[3].mxu1  ;;  %1915 = vtanh.f32 %v701_v52 }
 0x104   :  { %v1914_v50 = vpop.eup %1913 }
 0x105   :  { %v695_v56 = vmul.f32 0.5, %v1914_v50  ;;  %v1916_v51 = vpop.eup %1915 }
 0x106   :  { %v703_v18 = vmul.f32 0.5, %v1916_v51 }
 0x107   :  { %v696_v53 = vadd.f32 0.5, %v695_v56 }
 0x108   :  { %v704_v60 = vadd.f32 0.5, %v703_v18 }
 0x109   :  { %v712_v58 = vmul.f32 %v711_v49, %v696_v53 }
 0x10b   :  { %v715_v59 = vadd.f32 %v713_v54, %v712_v58 }
 0x10d   :  { %1917 = vtanh.f32 %v715_v59 }
 0x117   :  { %v1918_v55 = vpop.eup %1917 }
 0x118   :  { %v717_v61 = vsub.f32 %v2225_v27, %v1918_v55  ;;  %v734_v27 = vld [vmem:[#allocation2 + $0x6] sm:$0x3f] }
 0x119   :  { %v823_v35 = vrot.slane %v734_v27, 2  ;;  %v832_v49 = vrot.slane %v734_v27, 4 }
 0x11a   :  { %v718_v34 = vmul.f32 %v717_v61, %v704_v60 }
 0x11c   :  { %v2435_v30 = vadd.f32 %v1918_v55, %v718_v34 }
 0x11e   :  { %v727_v62 = vrot.slane %v2435_v30, %v2433_v33  ;;  %1626 = vst.sshfl [vmem:[#allocation4] sm:$0x1 pattern:$0x73625140] %v2435_v30  ;;  %v735_v19 = vpack.c.bf16 %v2435_v30, %v2435_v30 }
 0x120   :  { %v728_v32 = vcombine.high %v727_v62, %v727_v62  ;;  %769 = vmatmul.mubr.bf16.vlgmr.msra.gmra.mrb[4].mxu0 %v735_v19  ;;  %1743 = vmatmul.mubr.bf16.vlgmr.msra.gmra.mrb[4].mxu1 %v735_v19 }
 0x121   :  { %856 = vmatpush1.bf16.msra.mxu0 %v2086_v1  ;;  %1747 = vmatpush3.bf16.msra.mxu1 %v2116_v7 }
 0x122   :  { %732 = vst [vmem:[#allocation4 + $0x8] sm:$0x1] %v728_v32  ;;  %857 = vmatprep.subr.bf16.mxu0 %v2095_v4  ;;  %1748 = vmatprep.subr.bf16.mxu1 %v2033_v2 }
 0x123   :  { %887 = vmatprep.mubr.bf16.mxu0 %v2034_v3  ;;  %1762 = vmatprep.mubr.msk.bf16.mxu1 %vm2035_vm0, %v2033_v2 }
 0x125   :  { %858 = vmatpush1.bf16.msra.mxu0 %v2103_v5  ;;  %1749 = vmatpush3.bf16.msra.mxu1 %v2134_v10 }
 0x126   :  { %859 = vmatprep.subr.bf16.mxu0 %v2110_v6  ;;  %1750 = vmatprep.subr.bf16.mxu1 %v2033_v2 }
 0x129   :  { %860 = vmatpush1.bf16.msra.mxu0 %v2122_v8  ;;  %1751 = vmatpush3.bf16.msra.mxu1 %v2153_v13 }
 0x12a   :  { %861 = vmatprep.subr.bf16.mxu0 %v2127_v9  ;;  %1752 = vmatprep.subr.bf16.mxu1 %v2033_v2 }
 0x12d   :  { %862 = vmatpush1.bf16.msra.mxu0 %v2140_v11  ;;  %1753 = vmatpush3.bf16.msra.mxu1 %v2172_v16 }
 0x12e   :  { %863 = vmatprep.subr.bf16.mxu0 %v2146_v12  ;;  %1754 = vmatprep.subr.bf16.mxu1 %v2033_v2 }
 0x131   :  { %864 = vmatpush1.bf16.msra.mxu0 %v2160_v14  ;;  %1755 = vmatpush3.bf16.msra.mxu1 %v2197_v21 }
 0x132   :  { %865 = vmatprep.subr.bf16.mxu0 %v2165_v15  ;;  %1756 = vmatprep.subr.bf16.mxu1 %v2033_v2 }
 0x135   :  { %866 = vmatpush1.bf16.msra.mxu0 %v2179_v17  ;;  %1757 = vmatpush3.bf16.msra.mxu1 %v2216_v24 }
 0x136   :  { %867 = vmatprep.subr.bf16.mxu0 %v2191_v20  ;;  %1758 = vmatprep.subr.bf16.mxu1 %v2033_v2 }
 0x139   :  { %868 = vmatpush1.bf16.msra.mxu0 %v2204_v22  ;;  %1759 = vmatpush3.bf16.msra.mxu1 %v2232_v28 }
 0x13a   :  { %869 = vmatprep.subr.bf16.mxu0 %v2210_v23  ;;  %1760 = vmatprep.subr.bf16.mxu1 %v2033_v2 }
 0x13d   :  { %870 = vmatpush1.bf16.msra.mxu0 %v2223_v26  ;;  %1761 = vmatpush3.bf16.msra.mxu1 %v2246_v31 }
 0x13e   :  { %974 = vmatprep.subr.bf16.mxu0 %v2081_v0  ;;  %1766 = vmatprep.subr.bf16.mxu1 %v2033_v2 }
 0x1f3   :  { %v770_v38 = vpop.f32.mrb[4].mxu0  ;;  %v811_v29 = vpop.f32.mrb[4].mxu1 }
 0x1f4   :  { %v817_v41 = vadd.f32 %v770_v38, %v734_v27  ;;  %v772_v42 = vpop.f32.mrb[5].mxu0  ;;  %v1744_v25 = vpop.f32.mrb[5].mxu1  ;;  %v830_v56 = vadd.f32 %v2428_v40, %v811_v29 }
 0x1f5   :  { %v774_v36 = vpop.f32.mrb[6].mxu0  ;;  %v814_v44 = vpop.f32.mrb[6].mxu1  ;;  %v825_v46 = vadd.f32 %v823_v35, %v772_v42 }
 0x1f6   :  { %v818_v37 = vmul.f32 0.5, %v817_v41  ;;  %v775_v39 = vpop.f32.mrb[7].mxu0  ;;  %v1745_v45 = vpop.f32.mrb[7].mxu1 }
 0x1f7   :  { %v826_v47 = vmul.f32 0.5, %v825_v46 }
 0x1f8   :  { %1919 = vtanh.f32 %v818_v37 }
 0x1f9   :  { %1921 = vtanh.f32 %v826_v47 }
 0x202   :  { %v1920_v48 = vpop.eup %1919 }
 0x203   :  { %v820_v52 = vmul.f32 0.5, %v1920_v48  ;;  %v1922_v58 = vpop.eup %1921 }
 0x204   :  { %v828_v59 = vmul.f32 0.5, %v1922_v58  ;;  %v2550_v58 = vld [vmem:[%s2854_s3 + $0x18] ss:$12 sps:$4 sm:$0xff]  }
 0x205   :  { %v821_v50 = vadd.f32 0.5, %v820_v52 }
 0x206   :  { %v829_v43 = vadd.f32 0.5, %v828_v59  ;;  %v2564_v59 = vld [vmem:[%s2854_s3 + $0x30] ss:$12 sps:$4 sm:$0xff]  }
 0x207   :  { %v831_v53 = vmul.f32 %v830_v56, %v821_v50 }
 0x209   :  { %v834_v54 = vadd.f32 %v832_v49, %v831_v53  ;;  %v2533_v53 = vld [vmem:[%s2854_s3] ss:$12 sps:$4 sm:$0xff]  }
 0x20b   :  { %1923 = vtanh.f32 %v834_v54  ;;  %v2540_v54 = vld [vmem:[%s2854_s3 + $0x1c] ss:$12 sps:$4 sm:$0xff]  }
 0x215   :  { %v1924_v51 = vpop.eup %1923 }
 0x216   :  { %v836_v57 = vsub.f32 %v2435_v30, %v1924_v51 }
 0x218   :  { %v837_v18 = vmul.f32 %v836_v57, %v829_v43 }
 0x21a   :  { %v2479_v63 = vadd.f32 %v1924_v51, %v837_v18 }
 0x21c   :  { %v846_v55 = vrot.slane %v2479_v63, %v2433_v33  ;;  %1627 = vst.sshfl [vmem:[#allocation4 + $0x1] sm:$0x1 pattern:$0x73625140] %v2479_v63  ;;  %v854_v60 = vpack.c.bf16 %v2479_v63, %v2479_v63 }
 0x21e   :  { %v847_v61 = vcombine.high %v846_v55, %v846_v55  ;;  %888 = vmatmul.mubr.bf16.vlgmr.msra.gmra.mrb[8].mxu0 %v854_v60  ;;  %1763 = vmatmul.mubr.bf16.vlgmr.msra.gmra.mrb[8].mxu1 %v854_v60 }
 0x21f   :  { %975 = vmatpush1.bf16.msra.mxu0 %v2086_v1  ;;  %1767 = vmatpush3.bf16.msra.mxu1 %v2116_v7  ;;  %v853_v1 = vld [vmem:[#allocation2 + $0xc] sm:$0x3f] }
 0x220   :  { %851 = vst [vmem:[#allocation4 + $0x9] sm:$0x1] %v847_v61  ;;  %976 = vmatprep.subr.bf16.mxu0 %v2095_v4  ;;  %1768 = vmatprep.subr.bf16.mxu1 %v2033_v2  ;;  %v942_v27 = vrot.slane %v853_v1, 2  ;;  %v951_v36 = vrot.slane %v853_v1, 4 }
 0x221   :  { %1006 = vmatprep.mubr.bf16.mxu0 %v2034_v3  ;;  %1782 = vmatprep.mubr.msk.bf16.mxu1 %vm2035_vm0, %v2033_v2 }
 0x223   :  { %977 = vmatpush1.bf16.msra.mxu0 %v2103_v5  ;;  %1769 = vmatpush3.bf16.msra.mxu1 %v2134_v10 }
 0x224   :  { %978 = vmatprep.subr.bf16.mxu0 %v2110_v6  ;;  %1770 = vmatprep.subr.bf16.mxu1 %v2033_v2 }
 0x227   :  { %979 = vmatpush1.bf16.msra.mxu0 %v2122_v8  ;;  %1771 = vmatpush3.bf16.msra.mxu1 %v2153_v13 }
 0x228   :  { %980 = vmatprep.subr.bf16.mxu0 %v2127_v9  ;;  %1772 = vmatprep.subr.bf16.mxu1 %v2033_v2 }
 0x22b   :  { %981 = vmatpush1.bf16.msra.mxu0 %v2140_v11  ;;  %1773 = vmatpush3.bf16.msra.mxu1 %v2172_v16 }
 0x22c   :  { %982 = vmatprep.subr.bf16.mxu0 %v2146_v12  ;;  %1774 = vmatprep.subr.bf16.mxu1 %v2033_v2 }
 0x22f   :  { %983 = vmatpush1.bf16.msra.mxu0 %v2160_v14  ;;  %1775 = vmatpush3.bf16.msra.mxu1 %v2197_v21 }
 0x230   :  { %984 = vmatprep.subr.bf16.mxu0 %v2165_v15  ;;  %1776 = vmatprep.subr.bf16.mxu1 %v2033_v2 }
 0x233   :  { %985 = vmatpush1.bf16.msra.mxu0 %v2179_v17  ;;  %1777 = vmatpush3.bf16.msra.mxu1 %v2216_v24 }
 0x234   :  { %986 = vmatprep.subr.bf16.mxu0 %v2191_v20  ;;  %1778 = vmatprep.subr.bf16.mxu1 %v2033_v2 }
 0x237   :  { %987 = vmatpush1.bf16.msra.mxu0 %v2204_v22  ;;  %1779 = vmatpush3.bf16.msra.mxu1 %v2232_v28 }
 0x238   :  { %988 = vmatprep.subr.bf16.mxu0 %v2210_v23  ;;  %1780 = vmatprep.subr.bf16.mxu1 %v2033_v2 }
 0x23b   :  { %989 = vmatpush1.bf16.msra.mxu0 %v2223_v26  ;;  %1781 = vmatpush3.bf16.msra.mxu1 %v2246_v31 }
 0x23c   :  { %1093 = vmatprep.subr.bf16.mxu0 %v2081_v0  ;;  %1786 = vmatprep.subr.bf16.mxu1 %v2033_v2 }
 0x2f1   :  { %v889_v4 = vpop.f32.mrb[8].mxu0  ;;  %v930_v5 = vpop.f32.mrb[8].mxu1 }
 0x2f2   :  { %v936_v6 = vadd.f32 %v889_v4, %v853_v1  ;;  %v891_v8 = vpop.f32.mrb[9].mxu0  ;;  %v1764_v9 = vpop.f32.mrb[9].mxu1  ;;  %v949_v25 = vadd.f32 %v2428_v40, %v930_v5 }
 0x2f3   :  { %v893_v34 = vpop.f32.mrb[10].mxu0  ;;  %v933_v30 = vpop.f32.mrb[10].mxu1  ;;  %v944_v38 = vadd.f32 %v942_v27, %v891_v8  ;;  %v2634_v27 = vld [vmem:[%s2854_s3 + $0x38] ss:$12 sps:$4 sm:$0xff]  }
 0x2f4   :  { %v937_v62 = vmul.f32 0.5, %v936_v6  ;;  %v894_v19 = vpop.f32.mrb[11].mxu0  ;;  %v1765_v32 = vpop.f32.mrb[11].mxu1 }
 0x2f5   :  { %v945_v29 = vmul.f32 0.5, %v944_v38  ;;  %v2613_v19 = vld [vmem:[%s2854_s3 + $0x8] ss:$12 sps:$4 sm:$0xff]   ;;  %v2625_v32 = vld [vmem:[%s2854_s3 + $0x20] ss:$12 sps:$4 sm:$0xff]  }
 0x2f6   :  { %1925 = vtanh.f32 %v937_v62  ;;  %v2642_v38 = vld [vmem:[%s2854_s3 + $0x48] ss:$12 sps:$4 sm:$0xff]  }
 0x2f7   :  { %1927 = vtanh.f32 %v945_v29  ;;  %v2648_v29 = vld [vmem:[%s2854_s3 + $0x50] ss:$12 sps:$4 sm:$0xff]  }
 0x300   :  { %v1926_v41 = vpop.eup %1925 }
 0x301   :  { %v939_v42 = vmul.f32 0.5, %v1926_v41  ;;  %v1928_v39 = vpop.eup %1927  ;;  %v2654_v41 = vld [vmem:[%s2854_s3 + $0x64] ss:$12 sps:$4 sm:$0xff]  }
 0x302   :  { %v947_v45 = vmul.f32 0.5, %v1928_v39  ;;  %v2699_v39 = vld [vmem:[%s2854_s3 + $0x90] ss:$12 sps:$4 sm:$0xff]  }
 0x303   :  { %v940_v0 = vadd.f32 0.5, %v939_v42  ;;  %v2661_v42 = vld [vmem:[%s2854_s3 + $0x60] ss:$12 sps:$4 sm:$0xff]  }
 0x304   :  { %v948_v46 = vadd.f32 0.5, %v947_v45  ;;  %v2705_v45 = vld [vmem:[%s2854_s3 + $0x98] ss:$12 sps:$4 sm:$0xff]  }
 0x305   :  { %v950_v44 = vmul.f32 %v949_v25, %v940_v0  ;;  %v2667_v0 = vld [vmem:[%s2854_s3 + $0x68] ss:$12 sps:$4 sm:$0xff]  }
 0x306   :  { %v2673_v25 = vld [vmem:[%s2854_s3 + $0x7c] ss:$12 sps:$4 sm:$0xff]  }
 0x307   :  { %v953_v37 = vadd.f32 %v951_v36, %v950_v44  ;;  %v2680_v36 = vld [vmem:[%s2854_s3 + $0x78] ss:$12 sps:$4 sm:$0xff]   ;;  %v2686_v44 = vld [vmem:[%s2854_s3 + $0x80] ss:$12 sps:$4 sm:$0xff]  }
 0x309   :  { %1929 = vtanh.f32 %v953_v37  ;;  %v2692_v37 = vld [vmem:[%s2854_s3 + $0x94] ss:$12 sps:$4 sm:$0xff]  }
 0x313   :  { %v1930_v35 = vpop.eup %1929 }
 0x314   :  { %v955_v47 = vsub.f32 %v2479_v63, %v1930_v35 }
 0x316   :  { %v956_v48 = vmul.f32 %v955_v47, %v948_v46  ;;  %v2718_v46 = vld [vmem:[%s2854_s3 + $0xa8] ss:$12 sps:$4 sm:$0xff]   ;;  %v2724_v47 = vld [vmem:[%s2854_s3 + $0xb0] ss:$12 sps:$4 sm:$0xff]  }
 0x318   :  { %v2523_v52 = vadd.f32 %v1930_v35, %v956_v48  ;;  %v2711_v35 = vld [vmem:[%s2854_s3 + $0xac] ss:$12 sps:$4 sm:$0xff]  }
 0x319   :  { %v1091_v48 = vld [vmem:[#allocation2 + $0x18] sm:$0x3f] }
 0x31a   :  { %v965_v50 = vrot.slane %v2523_v52, %v2433_v33  ;;  %1628 = vst.sshfl [vmem:[#allocation4 + $0x2] sm:$0x1 pattern:$0x73625140] %v2523_v52  ;;  %v973_v56 = vpack.c.bf16 %v2523_v52, %v2523_v52 }
 0x31c   :  { %v966_v49 = vcombine.high %v965_v50, %v965_v50  ;;  %1007 = vmatmul.mubr.bf16.vlgmr.msra.gmra.mrb[12].mxu0 %v973_v56  ;;  %1783 = vmatmul.mubr.bf16.vlgmr.msra.gmra.mrb[12].mxu1 %v973_v56 }
 0x31d   :  { %1094 = vmatpush1.bf16.msra.mxu0 %v2533_v53  ;;  %1787 = vmatpush3.bf16.msra.mxu1 %v2116_v7  ;;  %v2557_v7 = vld [vmem:[%s2854_s3 + $0x34] ss:$12 sps:$4 sm:$0xff]  }
 0x31e   :  { %970 = vst [vmem:[#allocation4 + $0xa] sm:$0x1] %v966_v49  ;;  %1095 = vmatprep.subr.bf16.mxu0 %v2540_v54  ;;  %1788 = vmatprep.subr.bf16.mxu1 %v2033_v2 }
 0x31f   :  { %1125 = vmatprep.mubr.bf16.mxu0 %v2034_v3  ;;  %1802 = vmatprep.mubr.msk.bf16.mxu1 %vm2035_vm0, %v2033_v2 }
 0x321   :  { %1096 = vmatpush1.bf16.msra.mxu0 %v2550_v58  ;;  %1789 = vmatpush3.bf16.msra.mxu1 %v2134_v10  ;;  %v2571_v10 = vld [vmem:[%s2854_s3 + $0x4c] ss:$12 sps:$4 sm:$0xff]  }
 0x322   :  { %1097 = vmatprep.subr.bf16.mxu0 %v2557_v7  ;;  %1790 = vmatprep.subr.bf16.mxu1 %v2033_v2 }
 0x325   :  { %1098 = vmatpush1.bf16.msra.mxu0 %v2564_v59  ;;  %1791 = vmatpush3.bf16.msra.mxu1 %v2153_v13 }
 0x326   :  { %1099 = vmatprep.subr.bf16.mxu0 %v2571_v10  ;;  %1792 = vmatprep.subr.bf16.mxu1 %v2033_v2 }
 0x329   :  { %1100 = vmatpush1.bf16.msra.mxu0 %v2140_v11  ;;  %1793 = vmatpush3.bf16.msra.mxu1 %v2172_v16  ;;  %v2596_v11 = vld [vmem:[%s2854_s3 + $0x4] ss:$12 sps:$4 sm:$0xff]   ;;  %s2039_s3 = smov [#allocation6]  }
 0x32a   :  { %1101 = vmatprep.subr.bf16.mxu0 %v2146_v12  ;;  %1794 = vmatprep.subr.bf16.mxu1 %v2033_v2  ;;  %v972_v12 = vld [vmem:[#allocation2 + $0x12] sm:$0x3f]  ;;  %s1589_s11 = sshll.u32 %s2039_s3, 4  ;;  %s1590_s11 = int_to_ptr.vmem [resolvable:$true] %s1589_s11 }
 0x32b   :  { %v1070_v63 = vrot.slane %v972_v12, 4  ;;  %s1985_s13 = scalar_lea.vmem %s1590_s11, 32  ;;  %p1990_p1 = scmp.lt.s32.totalorder %s1590_s11, %s1590_s11 }
 0x32c   :  { %p1986_p0 = scmp.ne.s32.totalorder %s1590_s11, %s1985_s13  ;;  %p1991_p2 = scmp.lt.s32.totalorder %s1985_s13, %s1985_s13 }
 0x32d   :  { %1102 = vmatpush1.bf16.msra.mxu0 %v2160_v14  ;;  %1795 = vmatpush3.bf16.msra.mxu1 %v2197_v21 }
 0x32e   :  { %1103 = vmatprep.subr.bf16.mxu0 %v2165_v15  ;;  %1796 = vmatprep.subr.bf16.mxu1 %v2033_v2  ;;  %p1992_p3 = por %p1991_p2, %p1990_p1 }
 0x330   :  { %p1993_p4 = pnand %p1992_p3, %p1986_p0 }
 0x331   :  { %1104 = vmatpush1.bf16.msra.mxu0 %v2179_v17  ;;  %1797 = vmatpush3.bf16.msra.mxu1 %v2216_v24 }
 0x332   :  { %1105 = vmatprep.subr.bf16.mxu0 %v2191_v20  ;;  %1798 = vmatprep.subr.bf16.mxu1 %v2033_v2 }
 0x335   :  { %1106 = vmatpush1.bf16.msra.mxu0 %v2204_v22  ;;  %1799 = vmatpush3.bf16.msra.mxu1 %v2232_v28 }
 0x336   :  { %1107 = vmatprep.subr.bf16.mxu0 %v2210_v23  ;;  %1800 = vmatprep.subr.bf16.mxu1 %v2033_v2 }
 0x339   :  { %1108 = vmatpush1.bf16.msra.mxu0 %v2223_v26  ;;  %1801 = vmatpush3.bf16.msra.mxu1 %v2246_v31  ;;  %v1061_v26 = vrot.slane %v972_v12, 2 }
 0x33a   :  { %1212 = vmatprep.subr.bf16.mxu0 %v2596_v11  ;;  %1806 = vmatprep.subr.bf16.mxu1 %v2033_v2 }
 0x3ef   :  { %v1008_v13 = vpop.f32.mrb[12].mxu0  ;;  %v1049_v14 = vpop.f32.mrb[12].mxu1 }
 0x3f0   :  { %v1055_v15 = vadd.f32 %v1008_v13, %v972_v12  ;;  %v1010_v16 = vpop.f32.mrb[13].mxu0  ;;  %v1784_v17 = vpop.f32.mrb[13].mxu1  ;;  %v1068_v18 = vadd.f32 %v2428_v40, %v1049_v14 }
 0x3f1   :  { %v1012_v20 = vpop.f32.mrb[14].mxu0  ;;  %v1052_v21 = vpop.f32.mrb[14].mxu1  ;;  %v1063_v28 = vadd.f32 %v1061_v26, %v1010_v16 }
 0x3f2   :  { %v1056_v22 = vmul.f32 0.5, %v1055_v15  ;;  %v1013_v23 = vpop.f32.mrb[15].mxu0  ;;  %v1785_v24 = vpop.f32.mrb[15].mxu1  ;;  %v1180_v20 = vrot.slane %v1091_v48, 2 }
 0x3f3   :  { %v1064_v31 = vmul.f32 0.5, %v1063_v28 }
 0x3f4   :  { %1931 = vtanh.f32 %v1056_v22 }
 0x3f5   :  { %1933 = vtanh.f32 %v1064_v31  ;;  %v1189_v31 = vrot.slane %v1091_v48, 4 }
 0x3fe   :  { %v1932_v51 = vpop.eup %1931 }
 0x3ff   :  { %v1058_v43 = vmul.f32 0.5, %v1932_v51  ;;  %v1934_v61 = vpop.eup %1933 }
 0x400   :  { %v1066_v1 = vmul.f32 0.5, %v1934_v61 }
 0x401   :  { %v1059_v57 = vadd.f32 0.5, %v1058_v43 }
 0x402   :  { %v1067_v5 = vadd.f32 0.5, %v1066_v1 }
 0x403   :  { %v1069_v55 = vmul.f32 %v1068_v18, %v1059_v57 }
 0x405   :  { %v1072_v60 = vadd.f32 %v1070_v63, %v1069_v55 }
 0x407   :  { %1935 = vtanh.f32 %v1072_v60 }
 0x411   :  { %v1936_v4 = vpop.eup %1935 }
 0x412   :  { %v1074_v6 = vsub.f32 %v2523_v52, %v1936_v4 }
 0x414   :  { %v1075_v8 = vmul.f32 %v1074_v6, %v1067_v5 }
 0x416   :  { %v2602_v9 = vadd.f32 %v1936_v4, %v1075_v8  ;;  %v1210_v8 = vld [vmem:[#allocation2 + $0x1e] sm:$0x3f] }
 0x418   :  { %v1084_v34 = vrot.slane %v2602_v9, %v2433_v33  ;;  %1629 = vst.sshfl [vmem:[#allocation4 + $0x3] sm:$0x1 pattern:$0x73625140] %v2602_v9  ;;  %v1092_v30 = vpack.c.bf16 %v2602_v9, %v2602_v9 }
 0x41a   :  { %v1085_v62 = vcombine.high %v1084_v34, %v1084_v34  ;;  %1126 = vmatmul.mubr.bf16.vlgmr.msra.gmra.mrb[16].mxu0 %v1092_v30  ;;  %1803 = vmatmul.mubr.bf16.vlgmr.msra.gmra.mrb[16].mxu1 %v1092_v30 }
 0x41b   :  { %1213 = vmatpush1.bf16.msra.mxu0 %v2533_v53  ;;  %1807 = vmatpush3.bf16.msra.mxu1 %v2613_v19 }
 0x41c   :  { %1089 = vst [vmem:[#allocation4 + $0xb] sm:$0x1] %v1085_v62  ;;  %1214 = vmatprep.subr.bf16.mxu0 %v2540_v54  ;;  %1808 = vmatprep.subr.bf16.mxu1 %v2033_v2 }
 0x41d   :  { %1244 = vmatprep.mubr.bf16.mxu0 %v2034_v3  ;;  %1822 = vmatprep.mubr.msk.bf16.mxu1 %vm2035_vm0, %v2033_v2 }
 0x41f   :  { %1215 = vmatpush1.bf16.msra.mxu0 %v2550_v58  ;;  %1809 = vmatpush3.bf16.msra.mxu1 %v2625_v32 }
 0x420   :  { %1216 = vmatprep.subr.bf16.mxu0 %v2557_v7  ;;  %1810 = vmatprep.subr.bf16.mxu1 %v2033_v2 }
 0x423   :  { %1217 = vmatpush1.bf16.msra.mxu0 %v2564_v59  ;;  %1811 = vmatpush3.bf16.msra.mxu1 %v2634_v27 }
 0x424   :  { %1218 = vmatprep.subr.bf16.mxu0 %v2571_v10  ;;  %1812 = vmatprep.subr.bf16.mxu1 %v2033_v2 }
 0x427   :  { %1219 = vmatpush1.bf16.msra.mxu0 %v2642_v38  ;;  %1813 = vmatpush3.bf16.msra.mxu1 %v2648_v29 }
 0x428   :  { %1220 = vmatprep.subr.bf16.mxu0 %v2654_v41  ;;  %1814 = vmatprep.subr.bf16.mxu1 %v2033_v2 }
 0x42b   :  { %1221 = vmatpush1.bf16.msra.mxu0 %v2661_v42  ;;  %1815 = vmatpush3.bf16.msra.mxu1 %v2667_v0 }
 0x42c   :  { %1222 = vmatprep.subr.bf16.mxu0 %v2673_v25  ;;  %1816 = vmatprep.subr.bf16.mxu1 %v2033_v2 }
 0x42f   :  { %1223 = vmatpush1.bf16.msra.mxu0 %v2680_v36  ;;  %1817 = vmatpush3.bf16.msra.mxu1 %v2686_v44 }
 0x430   :  { %1224 = vmatprep.subr.bf16.mxu0 %v2692_v37  ;;  %1818 = vmatprep.subr.bf16.mxu1 %v2033_v2 }
 0x433   :  { %1225 = vmatpush1.bf16.msra.mxu0 %v2699_v39  ;;  %1819 = vmatpush3.bf16.msra.mxu1 %v2705_v45 }
 0x434   :  { %1226 = vmatprep.subr.bf16.mxu0 %v2711_v35  ;;  %1820 = vmatprep.subr.bf16.mxu1 %v2033_v2 }
 0x437   :  { %1227 = vmatpush1.bf16.msra.mxu0 %v2718_v46  ;;  %1821 = vmatpush3.bf16.msra.mxu1 %v2724_v47 }
 0x438   :  { %1331 = vmatprep.subr.bf16.mxu0 %v2596_v11  ;;  %1826 = vmatprep.subr.bf16.mxu1 %v2033_v2 }
 0x4ed   :  { %v1127_v52 = vpop.f32.mrb[16].mxu0  ;;  %v1168_v50 = vpop.f32.mrb[16].mxu1 }
 0x4ee   :  { %v1174_v56 = vadd.f32 %v1127_v52, %v1091_v48  ;;  %v1129_v49 = vpop.f32.mrb[17].mxu0  ;;  %v1804_v12 = vpop.f32.mrb[17].mxu1  ;;  %v1187_v28 = vadd.f32 %v2428_v40, %v1168_v50 }
 0x4ef   :  { %v1131_v13 = vpop.f32.mrb[18].mxu0  ;;  %v1171_v14 = vpop.f32.mrb[18].mxu1  ;;  %v1182_v21 = vadd.f32 %v1180_v20, %v1129_v49 }
 0x4f0   :  { %v1175_v15 = vmul.f32 0.5, %v1174_v56  ;;  %v1132_v16 = vpop.f32.mrb[19].mxu0  ;;  %v1805_v17 = vpop.f32.mrb[19].mxu1  ;;  %v1299_v13 = vrot.slane %v1210_v8, 2 }
 0x4f1   :  { %v1183_v22 = vmul.f32 0.5, %v1182_v21  ;;  %v1308_v21 = vrot.slane %v1210_v8, 4 }
 0x4f2   :  { %1937 = vtanh.f32 %v1175_v15 }
 0x4f3   :  { %1939 = vtanh.f32 %v1183_v22 }
 0x4fc   :  { %v1938_v23 = vpop.eup %1937 }
 0x4fd   :  { %v1177_v24 = vmul.f32 0.5, %v1938_v23  ;;  %v1940_v57 = vpop.eup %1939 }
 0x4fe   :  { %v1185_v18 = vmul.f32 0.5, %v1940_v57 }
 0x4ff   :  { %v1178_v26 = vadd.f32 0.5, %v1177_v24 }
 0x500   :  { %v1186_v55 = vadd.f32 0.5, %v1185_v18 }
 0x501   :  { %v1188_v51 = vmul.f32 %v1187_v28, %v1178_v26 }
 0x503   :  { %v1191_v43 = vadd.f32 %v1189_v31, %v1188_v51 }
 0x505   :  { %1941 = vtanh.f32 %v1191_v43 }
 0x50f   :  { %v1942_v63 = vpop.eup %1941 }
 0x510   :  { %v1193_v60 = vsub.f32 %v2602_v9, %v1942_v63 }
 0x512   :  { %v1194_v61 = vmul.f32 %v1193_v60, %v1186_v55 }
 0x514   :  { %v2731_v1 = vadd.f32 %v1942_v63, %v1194_v61 }
 0x516   :  { %v1203_v4 = vrot.slane %v2731_v1, %v2433_v33  ;;  %1630 = vst.sshfl [vmem:[#allocation4 + $0x4] sm:$0x1 pattern:$0x73625140] %v2731_v1  ;;  %v1211_v5 = vpack.c.bf16 %v2731_v1, %v2731_v1 }
 0x518   :  { %v1204_v6 = vcombine.high %v1203_v4, %v1203_v4  ;;  %1245 = vmatmul.mubr.bf16.vlgmr.msra.gmra.mrb[20].mxu0 %v1211_v5  ;;  %1823 = vmatmul.mubr.bf16.vlgmr.msra.gmra.mrb[20].mxu1 %v1211_v5 }
 0x519   :  { %1332 = vmatpush1.bf16.msra.mxu0 %v2533_v53  ;;  %1827 = vmatpush3.bf16.msra.mxu1 %v2613_v19 }
 0x51a   :  { %1208 = vst [vmem:[#allocation4 + $0xc] sm:$0x1] %v1204_v6  ;;  %1333 = vmatprep.subr.bf16.mxu0 %v2540_v54  ;;  %1828 = vmatprep.subr.bf16.mxu1 %v2033_v2 }
 0x51b   :  { %1363 = vmatprep.mubr.bf16.mxu0 %v2034_v3  ;;  %1842 = vmatprep.mubr.msk.bf16.mxu1 %vm2035_vm0, %v2033_v2 }
 0x51d   :  { %1334 = vmatpush1.bf16.msra.mxu0 %v2550_v58  ;;  %1829 = vmatpush3.bf16.msra.mxu1 %v2625_v32 }
 0x51e   :  { %1335 = vmatprep.subr.bf16.mxu0 %v2557_v7  ;;  %1830 = vmatprep.subr.bf16.mxu1 %v2033_v2 }
 0x521   :  { %1336 = vmatpush1.bf16.msra.mxu0 %v2564_v59  ;;  %1831 = vmatpush3.bf16.msra.mxu1 %v2634_v27 }
 0x522   :  { %1337 = vmatprep.subr.bf16.mxu0 %v2571_v10  ;;  %1832 = vmatprep.subr.bf16.mxu1 %v2033_v2 }
 0x525   :  { %1338 = vmatpush1.bf16.msra.mxu0 %v2642_v38  ;;  %1833 = vmatpush3.bf16.msra.mxu1 %v2648_v29 }
 0x526   :  { %1339 = vmatprep.subr.bf16.mxu0 %v2654_v41  ;;  %1834 = vmatprep.subr.bf16.mxu1 %v2033_v2 }
 0x529   :  { %1340 = vmatpush1.bf16.msra.mxu0 %v2661_v42  ;;  %1835 = vmatpush3.bf16.msra.mxu1 %v2667_v0 }
 0x52a   :  { %1341 = vmatprep.subr.bf16.mxu0 %v2673_v25  ;;  %1836 = vmatprep.subr.bf16.mxu1 %v2033_v2 }
 0x52d   :  { %1342 = vmatpush1.bf16.msra.mxu0 %v2680_v36  ;;  %1837 = vmatpush3.bf16.msra.mxu1 %v2686_v44 }
 0x52e   :  { %1343 = vmatprep.subr.bf16.mxu0 %v2692_v37  ;;  %1838 = vmatprep.subr.bf16.mxu1 %v2033_v2 }
 0x531   :  { %1344 = vmatpush1.bf16.msra.mxu0 %v2699_v39  ;;  %1839 = vmatpush3.bf16.msra.mxu1 %v2705_v45 }
 0x532   :  { %1345 = vmatprep.subr.bf16.mxu0 %v2711_v35  ;;  %1840 = vmatprep.subr.bf16.mxu1 %v2033_v2 }
 0x535   :  { %1346 = vmatpush1.bf16.msra.mxu0 %v2718_v46  ;;  %1841 = vmatpush3.bf16.msra.mxu1 %v2724_v47 }
 0x536   :  { %1450 = vmatprep.subr.bf16.mxu0 %v2596_v11  ;;  %1846 = vmatprep.subr.bf16.mxu1 %v2033_v2 }
 0x5eb   :  { %v1246_v9 = vpop.f32.mrb[20].mxu0  ;;  %v1287_v34 = vpop.f32.mrb[20].mxu1 }
 0x5ec   :  { %v1293_v30 = vadd.f32 %v1246_v9, %v1210_v8  ;;  %v1248_v62 = vpop.f32.mrb[21].mxu0  ;;  %v1824_v48 = vpop.f32.mrb[21].mxu1  ;;  %v1306_v20 = vadd.f32 %v2428_v40, %v1287_v34  ;;  %v1448_v8 = vld [vmem:[#allocation2 + $0x2a] sm:$0x3f] }
 0x5ed   :  { %v1250_v52 = vpop.f32.mrb[22].mxu0  ;;  %v1290_v50 = vpop.f32.mrb[22].mxu1  ;;  %v1301_v14 = vadd.f32 %v1299_v13, %v1248_v62  ;;  %v1537_v13 = vrot.slane %v1448_v8, 2 }
 0x5ee   :  { %v1294_v56 = vmul.f32 0.5, %v1293_v30  ;;  %v1251_v49 = vpop.f32.mrb[23].mxu0  ;;  %v1825_v12 = vpop.f32.mrb[23].mxu1 }
 0x5ef   :  { %v1302_v15 = vmul.f32 0.5, %v1301_v14 }
 0x5f0   :  { %1943 = vtanh.f32 %v1294_v56 }
 0x5f1   :  { %1945 = vtanh.f32 %v1302_v15 }
 0x5fa   :  { %v1944_v16 = vpop.eup %1943 }
 0x5fb   :  { %v1296_v17 = vmul.f32 0.5, %v1944_v16  ;;  %v1946_v24 = vpop.eup %1945 }
 0x5fc   :  { %v1304_v26 = vmul.f32 0.5, %v1946_v24 }
 0x5fd   :  { %v1297_v11 = vadd.f32 0.5, %v1296_v17 }
 0x5fe   :  { %v1305_v31 = vadd.f32 0.5, %v1304_v26 }
 0x5ff   :  { %v1307_v22 = vmul.f32 %v1306_v20, %v1297_v11 }
 0x601   :  { %v1310_v23 = vadd.f32 %v1308_v21, %v1307_v22  ;;  %v1546_v21 = vrot.slane %v1448_v8, 4 }
 0x603   :  { %1947 = vtanh.f32 %v1310_v23 }
 0x60d   :  { %v1948_v28 = vpop.eup %1947 }
 0x60e   :  { %v1312_v51 = vsub.f32 %v2731_v1, %v1948_v28 }
 0x610   :  { %v1313_v43 = vmul.f32 %v1312_v51, %v1305_v31 }
 0x612   :  { %v2775_v57 = vadd.f32 %v1948_v28, %v1313_v43 }
 0x614   :  { %v1322_v18 = vrot.slane %v2775_v57, %v2433_v33  ;;  %1631 = vst.sshfl [vmem:[#allocation4 + $0x5] sm:$0x1 pattern:$0x73625140] %v2775_v57  ;;  %v1330_v63 = vpack.c.bf16 %v2775_v57, %v2775_v57 }
 0x616   :  { %v1323_v55 = vcombine.high %v1322_v18, %v1322_v18  ;;  %1364 = vmatmul.mubr.bf16.vlgmr.msra.gmra.mrb[24].mxu0 %v1330_v63  ;;  %1843 = vmatmul.mubr.bf16.vlgmr.msra.gmra.mrb[24].mxu1 %v1330_v63 }
 0x617   :  { %1451 = vmatpush1.bf16.msra.mxu0 %v2533_v53  ;;  %1847 = vmatpush3.bf16.msra.mxu1 %v2613_v19 }
 0x618   :  { %1327 = vst [vmem:[#allocation4 + $0xd] sm:$0x1] %v1323_v55  ;;  %1452 = vmatprep.subr.bf16.mxu0 %v2540_v54  ;;  %1848 = vmatprep.subr.bf16.mxu1 %v2033_v2 }
 0x619   :  { %1482 = vmatprep.mubr.bf16.mxu0 %v2034_v3  ;;  %1862 = vmatprep.mubr.msk.bf16.mxu1 %vm2035_vm0, %v2033_v2  ;;  %v1329_v3 = vld [vmem:[#allocation2 + $0x24] sm:$0x3f] }
 0x61b   :  { %1453 = vmatpush1.bf16.msra.mxu0 %v2550_v58  ;;  %1849 = vmatpush3.bf16.msra.mxu1 %v2625_v32 }
 0x61c   :  { %1454 = vmatprep.subr.bf16.mxu0 %v2557_v7  ;;  %1850 = vmatprep.subr.bf16.mxu1 %v2033_v2 }
 0x61f   :  { %1455 = vmatpush1.bf16.msra.mxu0 %v2564_v59  ;;  %1851 = vmatpush3.bf16.msra.mxu1 %v2634_v27 }
 0x620   :  { %1456 = vmatprep.subr.bf16.mxu0 %v2571_v10  ;;  %1852 = vmatprep.subr.bf16.mxu1 %v2033_v2 }
 0x623   :  { %1457 = vmatpush1.bf16.msra.mxu0 %v2642_v38  ;;  %1853 = vmatpush3.bf16.msra.mxu1 %v2648_v29  ;;  %v1418_v29 = vrot.slane %v1329_v3, 2 }
 0x624   :  { %1458 = vmatprep.subr.bf16.mxu0 %v2654_v41  ;;  %1854 = vmatprep.subr.bf16.mxu1 %v2033_v2 }
 0x627   :  { %1459 = vmatpush1.bf16.msra.mxu0 %v2661_v42  ;;  %1855 = vmatpush3.bf16.msra.mxu1 %v2667_v0 }
 0x628   :  { %1460 = vmatprep.subr.bf16.mxu0 %v2673_v25  ;;  %1856 = vmatprep.subr.bf16.mxu1 %v2033_v2 }
 0x62b   :  { %1461 = vmatpush1.bf16.msra.mxu0 %v2680_v36  ;;  %1857 = vmatpush3.bf16.msra.mxu1 %v2686_v44  ;;  %v1427_v44 = vrot.slane %v1329_v3, 4 }
 0x62c   :  { %1462 = vmatprep.subr.bf16.mxu0 %v2692_v37  ;;  %1858 = vmatprep.subr.bf16.mxu1 %v2033_v2 }
 0x62f   :  { %1463 = vmatpush1.bf16.msra.mxu0 %v2699_v39  ;;  %1859 = vmatpush3.bf16.msra.mxu1 %v2705_v45 }
 0x630   :  { %1464 = vmatprep.subr.bf16.mxu0 %v2711_v35  ;;  %1860 = vmatprep.subr.bf16.mxu1 %v2033_v2 }
 0x633   :  { %1465 = vmatpush1.bf16.msra.mxu0 %v2718_v46  ;;  %1861 = vmatpush3.bf16.msra.mxu1 %v2724_v47 }
 0x6e9   :  { %v1365_v53 = vpop.f32.mrb[24].mxu0  ;;  %v1406_v54 = vpop.f32.mrb[24].mxu1 }
 0x6ea   :  { %v1412_v58 = vadd.f32 %v1365_v53, %v1329_v3  ;;  %v1367_v7 = vpop.f32.mrb[25].mxu0  ;;  %v1844_v59 = vpop.f32.mrb[25].mxu1  ;;  %v1425_v36 = vadd.f32 %v2428_v40, %v1406_v54 }
 0x6eb   :  { %v1369_v10 = vpop.f32.mrb[26].mxu0  ;;  %v1409_v19 = vpop.f32.mrb[26].mxu1  ;;  %v1420_v41 = vadd.f32 %v1418_v29, %v1367_v7 }
 0x6ec   :  { %v1413_v32 = vmul.f32 0.5, %v1412_v58  ;;  %v1370_v27 = vpop.f32.mrb[27].mxu0  ;;  %v1845_v38 = vpop.f32.mrb[27].mxu1 }
 0x6ed   :  { %v1421_v42 = vmul.f32 0.5, %v1420_v41 }
 0x6ee   :  { %1949 = vtanh.f32 %v1413_v32 }
 0x6ef   :  { %1951 = vtanh.f32 %v1421_v42 }
 0x6f8   :  { %v1950_v2 = vpop.eup %1949 }
 0x6f9   :  { %v1415_v0 = vmul.f32 0.5, %v1950_v2  ;;  %v1952_v45 = vpop.eup %1951 }
 0x6fa   :  { %v1423_v35 = vmul.f32 0.5, %v1952_v45 }
 0x6fb   :  { %v1416_v25 = vadd.f32 0.5, %v1415_v0 }
 0x6fc   :  { %v1424_v47 = vadd.f32 0.5, %v1423_v35 }
 0x6fd   :  { %v1426_v37 = vmul.f32 %v1425_v36, %v1416_v25 }
 0x6ff   :  { %v1429_v39 = vadd.f32 %v1427_v44, %v1426_v37 }
 0x701   :  { %1953 = vtanh.f32 %v1429_v39 }
 0x70b   :  { %v1954_v46 = vpop.eup %1953 }
 0x70c   :  { %v1431_v60 = vsub.f32 %v2775_v57, %v1954_v46 }
 0x70e   :  { %v1432_v61 = vmul.f32 %v1431_v60, %v1424_v47 }
 0x710   :  { %v1433_v1 = vadd.f32 %v1954_v46, %v1432_v61 }
 0x712   :  { %v1441_v4 = vrot.slane %v1433_v1, %v2433_v33  ;;  %1632 = vst.sshfl [vmem:[#allocation4 + $0x6] sm:$0x1 pattern:$0x73625140] %v1433_v1  ;;  %v1449_v5 = vpack.c.bf16 %v1433_v1, %v1433_v1 }
 0x714   :  { %v1442_v6 = vcombine.high %v1441_v4, %v1441_v4  ;;  %1483 = vmatmul.mubr.bf16.vlgmr.msra.gmra.mrb[28].mxu0 %v1449_v5  ;;  %1863 = vmatmul.mubr.bf16.vlgmr.msra.gmra.mrb[28].mxu1 %v1449_v5 }
 0x716   :  { %1446 = vst [vmem:[#allocation4 + $0xe] sm:$0x1] %v1442_v6 }
 0x7e7   :  { %v1484_v9 = vpop.f32.mrb[28].mxu0  ;;  %v1525_v34 = vpop.f32.mrb[28].mxu1 }
 0x7e8   :  { %v1531_v30 = vadd.f32 %v1484_v9, %v1448_v8  ;;  %v1486_v62 = vpop.f32.mrb[29].mxu0  ;;  %v1864_v48 = vpop.f32.mrb[29].mxu1  ;;  %v1544_v20 = vadd.f32 %v2428_v40, %v1525_v34 }
 0x7e9   :  { %v1488_v52 = vpop.f32.mrb[30].mxu0  ;;  %v1528_v50 = vpop.f32.mrb[30].mxu1  ;;  %v1539_v14 = vadd.f32 %v1537_v13, %v1486_v62 }
 0x7ea   :  { %v1532_v56 = vmul.f32 0.5, %v1531_v30  ;;  %v1489_v49 = vpop.f32.mrb[31].mxu0  ;;  %v1865_v12 = vpop.f32.mrb[31].mxu1 }
 0x7eb   :  { %v1540_v15 = vmul.f32 0.5, %v1539_v14 }
 0x7ec   :  { %1955 = vtanh.f32 %v1532_v56 }
 0x7ed   :  { %1957 = vtanh.f32 %v1540_v15 }
 0x7f6   :  { %v1956_v16 = vpop.eup %1955 }
 0x7f7   :  { %v1534_v17 = vmul.f32 0.5, %v1956_v16  ;;  %v1958_v24 = vpop.eup %1957 }
 0x7f8   :  { %v1542_v26 = vmul.f32 0.5, %v1958_v24 }
 0x7f9   :  { %v1535_v11 = vadd.f32 0.5, %v1534_v17 }
 0x7fa   :  { %v1543_v31 = vadd.f32 0.5, %v1542_v26 }
 0x7fb   :  { %v1545_v22 = vmul.f32 %v1544_v20, %v1535_v11 }
 0x7fd   :  { %v1548_v23 = vadd.f32 %v1546_v21, %v1545_v22 }
 0x7ff   :  { %1959 = vtanh.f32 %v1548_v23 }
 0x809   :  { %v1960_v28 = vpop.eup %1959 }
 0x80a   :  { %v1550_v51 = vsub.f32 %v1433_v1, %v1960_v28 }
 0x80c   :  { %v1551_v43 = vmul.f32 %v1550_v51, %v1543_v31 }
 0x80e   :  { %v1552_v57 = vadd.f32 %v1960_v28, %v1551_v43 }
 0x810   :  { %v1560_v18 = vrot.slane %v1552_v57, %v2433_v33  ;;  %1633 = vst.sshfl [vmem:[#allocation4 + $0x7] sm:$0x1 pattern:$0x73625140] %v1552_v57  ;;  %1566 = vst [vmem:[#allocation3] sm:$0x3] %v1552_v57 }
 0x811   :  { %1570 = vst [vmem:[#allocation6] sm:$0x3] %v1552_v57 }
 0x812   :  { %1996 = shalt.err (!%p1993_p4)
}
 0x813   :  { %s1997_s2 = scalar_lea.hbm %s2857_s6, 32 }
 0x814   :  { %p1998_p5 = scmp.ne.s32.totalorder %s2857_s6, %s1997_s2  ;;  %p2001_p6 = scmp.lt.u32.totalorder %s1997_s2, %s2857_s6 }
 0x816   :  { %p2003_p7 = pnand %p2001_p6, %p1998_p5 }
 0x818   :  { %2006 = shalt.err (!%p2003_p7)
}
 0x819   :  { %1592 = dma.vmem_to_hbm [thread:$0]  %s1590_s11, 32, %s2857_s6, [#allocation7]   ;;  %v1561_v40 = vcombine.high %v1560_v18, %v1560_v18 }
 0x81a   :  { %s2007_s20 = scalar_lea.vmem %s2820_s0, 256  ;;  %p2012_p9 = scmp.lt.s32.totalorder %s2820_s0, %s2820_s0 }
 0x81b   :  { %1565 = vst [vmem:[#allocation4 + $0xf] sm:$0x1] %v1561_v40  ;;  %p2008_p8 = scmp.ne.s32.totalorder %s2820_s0, %s2007_s20  ;;  %p2013_p10 = scmp.lt.s32.totalorder %s2007_s20, %s2007_s20 }
 0x81d   :  { %p2014_p11 = por %p2013_p10, %p2012_p9 }
 0x81f   :  { %p2015_p12 = pnand %p2014_p11, %p2008_p8 }
 0x821   :  { %2018 = shalt.err (!%p2015_p12)
}
 0x822   :  { %s2019_s23 = scalar_lea.hbm %s2856_s5, 256 }
 0x823   :  { %p2020_p13 = scmp.ne.s32.totalorder %s2856_s5, %s2019_s23  ;;  %p2023_p0 = scmp.lt.u32.totalorder %s2019_s23, %s2856_s5 }
 0x825   :  { %p2025_p1 = pnand %p2023_p0, %p2020_p13 }
 0x827   :  { %2028 = shalt.err (!%p2025_p1)
}
 0x828   :  { %s2041_s27 = smov 128   ;;  %s2042_s28 = smov 8  }
 0x829   :  { %1582 = dma.vmem_to_hbm [thread:$0]  %s2820_s0, 256, %s2856_s5, [#allocation5], %s2041_s27, %s2041_s27, %s2042_s28  }
 0x82a   :  { %2029 = dma.done.wait [#allocation5], 256  }
 0x82b   :  { %2030 = vsyncadd [#allocation5], 4294967040 }
 0x82c   :  { %2031 = dma.done.wait [#allocation7], 32  }
 0x82d   :  { %2032 = vsyncadd [#allocation7], 4294967264 }
 0x82e   :  { %1599 = vsyncpa [#allocation5], 1 }
 0x82f   :  { %1600 = vsyncpa [#allocation7], 1 }

</bundles_post_ra>
